<compile_context>
chip_gen: v7x
topology: tpu7x:2x2x1
jax: 0.10.0
libtpu: 0.0.40
codegen_flags: <defaults>
</compile_context>

<pallas_src>
import jax
import jax.numpy as jnp
from jax.experimental import pallas as pl
from jax.experimental.pallas import tpu as pltpu

# ---- synthetic problem sizes (example only; wrapper derives from shapes) ----
B = 12        # batch size (padded to 16 -> grid of two 8-row batch tiles)
H = 8         # max history length (GRU sequence length)
D = 64        # news_embedding_dim == GRU hidden size
N_NEWS = 4    # candidate news per user (only sets the final expand)

LANE = 128    # vreg lane width
SUB = 8       # f32 sublane tile height


# ---- Pallas kernel: one batch tile per grid step --------------------------------
def _lstur_gru_kernel(x_ref, h0_ref, len_ref, wih_ref, bih_ref, whh_ref,
                      bhhn_ref, out_ref):
    # x_ref   : [H, TB, DP] time-major history tile (zero-padded cols >= D)
    # h0_ref  : [TB, DP]    user long-term embedding = GRU initial hidden state
    # len_ref : [TB, DP]    per-user history length, broadcast across lanes
    # wih_ref : [DP, 3*DP]  input->gates weights; 128-lane gate blocks (r|z|n)
    # bih_ref : [1, 3*DP]   b_ih with b_hh's r/z parts pre-folded in
    # whh_ref : [DP, 3*DP]  hidden->gates weights; 128-lane gate blocks (r|z|n)
    # bhhn_ref: [1, DP]     b_hh n-gate part (sits inside the r * (...) term)
    # out_ref : [TB, DP]    final hidden state per user (one unmasked store)
    H_, TB, DP = x_ref.shape

    # Hoisted loop invariants (JAX does not CSE per-iteration loads/broadcasts).
    w_hh = whh_ref[...]                                            # [DP, 3*DP]
    b_hh_n = jnp.broadcast_to(bhhn_ref[...], (TB, DP))             # [TB, DP]
    lens = len_ref[...]                                            # [TB, DP]
    h = h0_ref[...]                                                # [TB, DP]

    # One MXU matmul for ALL timesteps' input-side gate projections.
    x = x_ref[...].reshape(H_ * TB, DP)       # free: TB % 8 == 0, DP on lanes
    xg = jnp.dot(x, wih_ref[...],
                 preferred_element_type=jnp.float32) + bih_ref[...]  # [H*TB, 3*DP]

    # Static unroll is fine for small H.  (For long histories, switch to
    # lax.fori_loop(..., unroll=True) with pl.ds slices to cap vreg pressure.)
    # NOTE: W_hh could additionally be pinned in the MXU across the recurrence
    # via pltpu.matmul_push_rhs / matmul_acc_lhs / matmul_pop.
    for t in range(H_):
        xg_t = xg[t * TB:(t + 1) * TB, :]     # whole (8,128)-aligned sublane tiles
        hg = jnp.dot(h, w_hh, preferred_element_type=jnp.float32)   # [TB, 3*DP]
        # 128-lane-aligned gate sub-views (free slices).
        r = jax.nn.sigmoid(xg_t[:, 0:DP] + hg[:, 0:DP])
        z = jax.nn.sigmoid(xg_t[:, DP:2 * DP] + hg[:, DP:2 * DP])
        n = jnp.tanh(xg_t[:, 2 * DP:3 * DP] + r * (hg[:, 2 * DP:3 * DP] + b_hh_n))
        h_new = (1.0 - z) * n + z * h
        # padded / empty-history steps keep h (step t valid iff t < len_b)
        h = jnp.where(lens > jnp.float32(t), h_new, h)

    out_ref[...] = h.astype(out_ref.dtype)


# ---- parameter repacking ---------------------------------------------------------
def _pack_gru_params(params, d, dp):
    """Repack PyTorch-convention GRU params ([3D, D] row blocks r|z|n) into a
    lane-aligned fused layout: [DP, 3*DP] column blocks, each gate padded to a
    128-lane boundary.  b_hh's r/z parts are folded into b_ih (additions under
    sigmoid commute); the n part stays separate (it lives inside
    r * (W_hn h + b_hn))."""
    w_ih_pt, w_hh_pt = params['weight_ih'], params['weight_hh']   # [3D, D]
    b_ih_pt, b_hh_pt = params['bias_ih'], params['bias_hh']       # [3D]

    def pack_w(w):
        out = jnp.zeros((dp, 3 * dp), jnp.float32)
        for g in range(3):
            out = out.at[:d, g * dp:g * dp + d].set(w[g * d:(g + 1) * d, :].T)
        return out

    def pack_b(b):
        out = jnp.zeros((1, 3 * dp), jnp.float32)
        for g in range(3):
            out = out.at[0, g * dp:g * dp + d].set(b[g * d:(g + 1) * d])
        return out

    w_ih = pack_w(w_ih_pt)
    w_hh = pack_w(w_hh_pt)
    b_ih = pack_b(b_ih_pt)
    b_hh = pack_b(b_hh_pt)
    b_ih = b_ih.at[:, 0:2 * dp].add(b_hh[:, 0:2 * dp])   # fold r/z hidden biases
    b_hh_n = b_hh[:, 2 * dp:3 * dp]                      # [1, DP]
    return w_ih, b_ih, w_hh, b_hh_n


# ---- wrapper ---------------------------------------------------------------------
@jax.jit
def lstur_forward(history_embedding, user_history_mask, user_embedding,
                  candidate_news_representation, params):
    b, h_len, d = history_embedding.shape
    news_num = candidate_news_representation.shape[1]
    dp = ((d + LANE - 1) // LANE) * LANE      # lane-aligned gate / hidden width
    tb = SUB                                  # batch tile rows per grid step
    bp = ((b + tb - 1) // tb) * tb            # batch padded to a tile multiple

    w_ih, b_ih, w_hh, b_hh_n = _pack_gru_params(params, d, dp)

    # Zero-pad batch -> bp and feature dim -> dp (padded hidden columns stay
    # exactly zero through the recurrence since padded weight rows/cols and
    # biases are zero).
    h0 = jnp.zeros((bp, dp), jnp.float32).at[:b, :d].set(user_embedding)

    # Time-major history so each GRU step reads a contiguous [tb, dp] row block.
    # TODO(synk): at production sizes, have the news encoder emit the history
    #             time-major (or fuse it) to avoid this standalone transpose.
    x_tm = jnp.zeros((h_len, bp, dp), jnp.float32).at[:, :b, :d].set(
        jnp.transpose(history_embedding, (1, 0, 2)))

    # user_history_num = mask.sum(dim=1); step t valid iff t < len_b.
    # Lane-dense per-user length (replaces the [H*B, 1] mask tensor).
    lens = jnp.sum(user_history_mask, axis=1).astype(jnp.float32)        # [B]
    lens_b = jnp.zeros((bp, dp), jnp.float32).at[:b, :].set(
        jnp.broadcast_to(lens[:, None], (b, dp)))

    h_pad = pl.pallas_call(
        _lstur_gru_kernel,
        out_shape=jax.ShapeDtypeStruct((bp, dp), jnp.float32),
        grid=(bp // tb,),
        in_specs=[
            pl.BlockSpec((h_len, tb, dp), lambda i: (0, i, 0)),  # history (time-major)
            pl.BlockSpec((tb, dp), lambda i: (i, 0)),            # h0 (long-term emb)
            pl.BlockSpec((tb, dp), lambda i: (i, 0)),            # history lengths
            pl.BlockSpec((dp, 3 * dp), lambda i: (0, 0)),        # W_ih (VMEM-resident)
            pl.BlockSpec((1, 3 * dp), lambda i: (0, 0)),         # b_ih (+ folded b_hh r/z)
            pl.BlockSpec((dp, 3 * dp), lambda i: (0, 0)),        # W_hh (VMEM-resident)
            pl.BlockSpec((1, dp), lambda i: (0, 0)),             # b_hh n-gate part
        ],
        out_specs=pl.BlockSpec((tb, dp), lambda i: (i, 0)),
        compiler_params=pltpu.CompilerParams(
            dimension_semantics=("parallel",)),   # batch-parallel (v7x: 2 TCs)
    )(x_tm, h0, lens_b, w_ih, b_ih, w_hh, b_hh_n)

    h_final = h_pad[:b, :d]
    # .unsqueeze(dim=1).expand(-1, news_num, -1)
    return jnp.broadcast_to(h_final[:, None, :], (b, news_num, d))


# ---- plain-JAX reference (PyTorch GRU math, batched) -----------------------------
def lstur_reference(history_embedding, user_history_mask, user_embedding,
                    candidate_news_representation, params):
    b, h_len, d = history_embedding.shape
    news_num = candidate_news_representation.shape[1]
    w_ih, w_hh = params['weight_ih'], params['weight_hh']   # [3D, D]
    b_ih, b_hh = params['bias_ih'], params['bias_hh']       # [3D]
    lens = jnp.sum(user_history_mask, axis=1)
    h = user_embedding
    for t in range(h_len):
        x_t = history_embedding[:, t, :]
        xg = x_t @ w_ih.T + b_ih
        hg = h @ w_hh.T + b_hh
        r = jax.nn.sigmoid(xg[:, :d] + hg[:, :d])
        z = jax.nn.sigmoid(xg[:, d:2 * d] + hg[:, d:2 * d])
        n = jnp.tanh(xg[:, 2 * d:] + r * hg[:, 2 * d:])
        h_new = (1.0 - z) * n + z * h
        m = (jnp.float32(t) < lens).astype(jnp.float32)[:, None]
        h = h + m * (h_new - h)
    return jnp.broadcast_to(h[:, None, :], (b, news_num, d))


def init_params(key):
    # LSTUR.initialize() uses orthogonal weights / zero biases; the forward
    # structure does not depend on the init scheme, so small random values are
    # used (nonzero biases exercise the bias-folding path).  PyTorch GRU layout:
    # weight_ih/hh are [3D, D] row blocks (r | z | n); biases are [3D].
    k1, k2, k3, k4 = jax.random.split(key, 4)
    scale = 1.0 / jnp.sqrt(jnp.float32(D))
    return {
        'weight_ih': scale * jax.random.normal(k1, (3 * D, D), jnp.float32),
        'weight_hh': scale * jax.random.normal(k2, (3 * D, D), jnp.float32),
        'bias_ih': 0.05 * jax.random.normal(k3, (3 * D,), jnp.float32),
        'bias_hh': 0.05 * jax.random.normal(k4, (3 * D,), jnp.float32),
    }


if __name__ == "__main__":
    key = jax.random.PRNGKey(0)
    k_p, k_h, k_u, k_c = jax.random.split(key, 4)
    params = init_params(k_p)

    # history_embedding stands in for news_encoder(...) output (external module)
    history_embedding = 0.1 * jax.random.normal(k_h, (B, H, D), jnp.float32)
    user_embedding = 0.1 * jax.random.normal(k_u, (B, D), jnp.float32)
    candidate_news_representation = 0.1 * jax.random.normal(
        k_c, (B, N_NEWS, D), jnp.float32)

    # contiguous-prefix history masks (pack_padded_sequence convention),
    # including empty histories (h0 passthrough) and full-length ones.
    hist_lens = jnp.array([5, 0, 8, 3, 1, 7, 0, 2, 6, 8, 4, 0], dtype=jnp.int32)
    user_history_mask = (jnp.arange(H)[None, :]
                         < hist_lens[:, None]).astype(jnp.float32)      # [B, H]

    out = lstur_forward(history_embedding, user_history_mask, user_embedding,
                        candidate_news_representation, params)
    out = jax.block_until_ready(out)

    ref = lstur_reference(history_embedding, user_history_mask, user_embedding,
                          candidate_news_representation, params)
    assert out.shape == (B, N_NEWS, D)
    assert jnp.allclose(out, ref, rtol=1e-3, atol=1e-3), \
        f"max abs diff = {float(jnp.max(jnp.abs(out - ref)))}"
    print("KERNEL_OK")
</pallas_src>

<mosaic_0001>
module attributes {stable_mosaic.version = 11 : i64} {
  func.func @_lstur_gru_kernel(%arg0: i32, %arg1: memref<8x8x128xf32, #tpu.memory_space<vmem>>, %arg2: memref<8x128xf32, #tpu.memory_space<vmem>>, %arg3: memref<8x128xf32, #tpu.memory_space<vmem>>, %arg4: memref<128x384xf32, #tpu.memory_space<vmem>>, %arg5: memref<1x384xf32, #tpu.memory_space<vmem>>, %arg6: memref<128x384xf32, #tpu.memory_space<vmem>>, %arg7: memref<1x128xf32, #tpu.memory_space<vmem>>, %arg8: memref<8x128xf32, #tpu.memory_space<vmem>>) attributes {dimension_semantics = [#tpu.dimension_semantics<parallel>], iteration_bounds = array<i64: 2>, scalar_prefetch = 0 : i64, scratch_operands = 0 : i64, tpu.core_type = #tpu.core_type<tc>, window_params = [{transform_indices = @transform_0, window_bounds = array<i64: 8, 8, 128>}, {transform_indices = @transform_1, window_bounds = array<i64: 8, 128>}, {transform_indices = @transform_2, window_bounds = array<i64: 8, 128>}, {pipeline_mode = #tpu.pipeline_mode<synchronous>, transform_indices = @transform_3, window_bounds = array<i64: 128, 384>}, {pipeline_mode = #tpu.pipeline_mode<synchronous>, transform_indices = @transform_4, window_bounds = array<i64: 1, 384>}, {pipeline_mode = #tpu.pipeline_mode<synchronous>, transform_indices = @transform_5, window_bounds = array<i64: 128, 384>}, {pipeline_mode = #tpu.pipeline_mode<synchronous>, transform_indices = @transform_6, window_bounds = array<i64: 1, 128>}, {transform_indices = @transform_7, window_bounds = array<i64: 8, 128>}]} {
    %c0 = arith.constant 0 : index
    %c0_0 = arith.constant 0 : index
    %0 = vector.load %arg6[%c0, %c0_0] : memref<128x384xf32, #tpu.memory_space<vmem>>, vector<128x384xf32>
    %c0_1 = arith.constant 0 : index
    %c0_2 = arith.constant 0 : index
    %1 = vector.load %arg7[%c0_1, %c0_2] : memref<1x128xf32, #tpu.memory_space<vmem>>, vector<1x128xf32>
    %2 = vector.shape_cast %1 : vector<1x128xf32> to vector<1x128xf32>
    %3 = vector.broadcast %2 : vector<1x128xf32> to vector<8x128xf32>
    %c0_3 = arith.constant 0 : index
    %c0_4 = arith.constant 0 : index
    %4 = vector.load %arg3[%c0_3, %c0_4] : memref<8x128xf32, #tpu.memory_space<vmem>>, vector<8x128xf32>
    %c0_5 = arith.constant 0 : index
    %c0_6 = arith.constant 0 : index
    %5 = vector.load %arg2[%c0_5, %c0_6] : memref<8x128xf32, #tpu.memory_space<vmem>>, vector<8x128xf32>
    %c0_7 = arith.constant 0 : index
    %c0_8 = arith.constant 0 : index
    %c0_9 = arith.constant 0 : index
    %6 = vector.load %arg1[%c0_7, %c0_8, %c0_9] : memref<8x8x128xf32, #tpu.memory_space<vmem>>, vector<8x8x128xf32>
    %7 = vector.shape_cast %6 : vector<8x8x128xf32> to vector<64x128xf32>
    %c0_10 = arith.constant 0 : index
    %c0_11 = arith.constant 0 : index
    %8 = vector.load %arg4[%c0_10, %c0_11] : memref<128x384xf32, #tpu.memory_space<vmem>>, vector<128x384xf32>
    %cst = arith.constant dense<0.000000e+00> : vector<64x384xf32>
    %9 = tpu.matmul %7, %8, %cst {dimension_numbers = #tpu.dot_dimension_numbers<[1], [0], [0], [1], [0, 0, 1, 1], [], []>} : vector<64x128xf32>, vector<128x384xf32>, vector<64x384xf32> -> vector<64x384xf32>
    %c0_12 = arith.constant 0 : index
    %c0_13 = arith.constant 0 : index
    %10 = vector.load %arg5[%c0_12, %c0_13] : memref<1x384xf32, #tpu.memory_space<vmem>>, vector<1x384xf32>
    %11 = vector.broadcast %10 : vector<1x384xf32> to vector<64x384xf32>
    %12 = arith.addf %9, %11 : vector<64x384xf32>
    %13 = vector.extract_strided_slice %12 {offsets = [0, 0], sizes = [8, 384], strides = [1, 1]} : vector<64x384xf32> to vector<8x384xf32>
    %cst_14 = arith.constant dense<0.000000e+00> : vector<8x384xf32>
    %14 = tpu.matmul %5, %0, %cst_14 {dimension_numbers = #tpu.dot_dimension_numbers<[1], [0], [0], [1], [0, 0, 1, 1], [], []>} : vector<8x128xf32>, vector<128x384xf32>, vector<8x384xf32> -> vector<8x384xf32>
    %15 = vector.extract_strided_slice %13 {offsets = [0, 0], sizes = [8, 128], strides = [1, 1]} : vector<8x384xf32> to vector<8x128xf32>
    %16 = vector.extract_strided_slice %14 {offsets = [0, 0], sizes = [8, 128], strides = [1, 1]} : vector<8x384xf32> to vector<8x128xf32>
    %17 = arith.addf %15, %16 : vector<8x128xf32>
    %18 = arith.negf %17 : vector<8x128xf32>
    %19 = math.exp %18 : vector<8x128xf32>
    %cst_15 = arith.constant 1.000000e+00 : f32
    %20 = vector.broadcast %cst_15 : f32 to vector<8x128xf32>
    %21 = arith.addf %20, %19 : vector<8x128xf32>
    %22 = arith.divf %20, %21 : vector<8x128xf32>
    %23 = vector.extract_strided_slice %13 {offsets = [0, 128], sizes = [8, 128], strides = [1, 1]} : vector<8x384xf32> to vector<8x128xf32>
    %24 = vector.extract_strided_slice %14 {offsets = [0, 128], sizes = [8, 128], strides = [1, 1]} : vector<8x384xf32> to vector<8x128xf32>
    %25 = arith.addf %23, %24 : vector<8x128xf32>
    %26 = arith.negf %25 : vector<8x128xf32>
    %27 = math.exp %26 : vector<8x128xf32>
    %cst_16 = arith.constant 1.000000e+00 : f32
    %28 = vector.broadcast %cst_16 : f32 to vector<8x128xf32>
    %29 = arith.addf %28, %27 : vector<8x128xf32>
    %30 = arith.divf %28, %29 : vector<8x128xf32>
    %31 = vector.extract_strided_slice %13 {offsets = [0, 256], sizes = [8, 128], strides = [1, 1]} : vector<8x384xf32> to vector<8x128xf32>
    %32 = vector.extract_strided_slice %14 {offsets = [0, 256], sizes = [8, 128], strides = [1, 1]} : vector<8x384xf32> to vector<8x128xf32>
    %33 = arith.addf %32, %3 : vector<8x128xf32>
    %34 = arith.mulf %22, %33 : vector<8x128xf32>
    %35 = arith.addf %31, %34 : vector<8x128xf32>
    %36 = math.tanh %35 : vector<8x128xf32>
    %cst_17 = arith.constant 1.000000e+00 : f32
    %37 = vector.broadcast %cst_17 : f32 to vector<8x128xf32>
    %38 = arith.subf %37, %30 : vector<8x128xf32>
    %39 = arith.mulf %38, %36 : vector<8x128xf32>
    %40 = arith.mulf %30, %5 : vector<8x128xf32>
    %41 = arith.addf %39, %40 : vector<8x128xf32>
    %cst_18 = arith.constant 0.000000e+00 : f32
    %42 = vector.broadcast %cst_18 : f32 to vector<8x128xf32>
    %43 = arith.cmpf ogt, %4, %42 : vector<8x128xf32>
    %44 = arith.select %43, %41, %5 : vector<8x128xi1>, vector<8x128xf32>
    %45 = vector.extract_strided_slice %12 {offsets = [8, 0], sizes = [8, 384], strides = [1, 1]} : vector<64x384xf32> to vector<8x384xf32>
    %cst_19 = arith.constant dense<0.000000e+00> : vector<8x384xf32>
    %46 = tpu.matmul %44, %0, %cst_19 {dimension_numbers = #tpu.dot_dimension_numbers<[1], [0], [0], [1], [0, 0, 1, 1], [], []>} : vector<8x128xf32>, vector<128x384xf32>, vector<8x384xf32> -> vector<8x384xf32>
    %47 = vector.extract_strided_slice %45 {offsets = [0, 0], sizes = [8, 128], strides = [1, 1]} : vector<8x384xf32> to vector<8x128xf32>
    %48 = vector.extract_strided_slice %46 {offsets = [0, 0], sizes = [8, 128], strides = [1, 1]} : vector<8x384xf32> to vector<8x128xf32>
    %49 = arith.addf %47, %48 : vector<8x128xf32>
    %50 = arith.negf %49 : vector<8x128xf32>
    %51 = math.exp %50 : vector<8x128xf32>
    %cst_20 = arith.constant 1.000000e+00 : f32
    %52 = vector.broadcast %cst_20 : f32 to vector<8x128xf32>
    %53 = arith.addf %52, %51 : vector<8x128xf32>
    %54 = arith.divf %52, %53 : vector<8x128xf32>
    %55 = vector.extract_strided_slice %45 {offsets = [0, 128], sizes = [8, 128], strides = [1, 1]} : vector<8x384xf32> to vector<8x128xf32>
    %56 = vector.extract_strided_slice %46 {offsets = [0, 128], sizes = [8, 128], strides = [1, 1]} : vector<8x384xf32> to vector<8x128xf32>
    %57 = arith.addf %55, %56 : vector<8x128xf32>
    %58 = arith.negf %57 : vector<8x128xf32>
    %59 = math.exp %58 : vector<8x128xf32>
    %cst_21 = arith.constant 1.000000e+00 : f32
    %60 = vector.broadcast %cst_21 : f32 to vector<8x128xf32>
    %61 = arith.addf %60, %59 : vector<8x128xf32>
    %62 = arith.divf %60, %61 : vector<8x128xf32>
    %63 = vector.extract_strided_slice %45 {offsets = [0, 256], sizes = [8, 128], strides = [1, 1]} : vector<8x384xf32> to vector<8x128xf32>
    %64 = vector.extract_strided_slice %46 {offsets = [0, 256], sizes = [8, 128], strides = [1, 1]} : vector<8x384xf32> to vector<8x128xf32>
    %65 = arith.addf %64, %3 : vector<8x128xf32>
    %66 = arith.mulf %54, %65 : vector<8x128xf32>
    %67 = arith.addf %63, %66 : vector<8x128xf32>
    %68 = math.tanh %67 : vector<8x128xf32>
    %cst_22 = arith.constant 1.000000e+00 : f32
    %69 = vector.broadcast %cst_22 : f32 to vector<8x128xf32>
    %70 = arith.subf %69, %62 : vector<8x128xf32>
    %71 = arith.mulf %70, %68 : vector<8x128xf32>
    %72 = arith.mulf %62, %44 : vector<8x128xf32>
    %73 = arith.addf %71, %72 : vector<8x128xf32>
    %cst_23 = arith.constant 1.000000e+00 : f32
    %74 = vector.broadcast %cst_23 : f32 to vector<8x128xf32>
    %75 = arith.cmpf ogt, %4, %74 : vector<8x128xf32>
    %76 = arith.select %75, %73, %44 : vector<8x128xi1>, vector<8x128xf32>
    %77 = vector.extract_strided_slice %12 {offsets = [16, 0], sizes = [8, 384], strides = [1, 1]} : vector<64x384xf32> to vector<8x384xf32>
    %cst_24 = arith.constant dense<0.000000e+00> : vector<8x384xf32>
    %78 = tpu.matmul %76, %0, %cst_24 {dimension_numbers = #tpu.dot_dimension_numbers<[1], [0], [0], [1], [0, 0, 1, 1], [], []>} : vector<8x128xf32>, vector<128x384xf32>, vector<8x384xf32> -> vector<8x384xf32>
    %79 = vector.extract_strided_slice %77 {offsets = [0, 0], sizes = [8, 128], strides = [1, 1]} : vector<8x384xf32> to vector<8x128xf32>
    %80 = vector.extract_strided_slice %78 {offsets = [0, 0], sizes = [8, 128], strides = [1, 1]} : vector<8x384xf32> to vector<8x128xf32>
    %81 = arith.addf %79, %80 : vector<8x128xf32>
    %82 = arith.negf %81 : vector<8x128xf32>
    %83 = math.exp %82 : vector<8x128xf32>
    %cst_25 = arith.constant 1.000000e+00 : f32
    %84 = vector.broadcast %cst_25 : f32 to vector<8x128xf32>
    %85 = arith.addf %84, %83 : vector<8x128xf32>
    %86 = arith.divf %84, %85 : vector<8x128xf32>
    %87 = vector.extract_strided_slice %77 {offsets = [0, 128], sizes = [8, 128], strides = [1, 1]} : vector<8x384xf32> to vector<8x128xf32>
    %88 = vector.extract_strided_slice %78 {offsets = [0, 128], sizes = [8, 128], strides = [1, 1]} : vector<8x384xf32> to vector<8x128xf32>
    %89 = arith.addf %87, %88 : vector<8x128xf32>
    %90 = arith.negf %89 : vector<8x128xf32>
    %91 = math.exp %90 : vector<8x128xf32>
    %cst_26 = arith.constant 1.000000e+00 : f32
    %92 = vector.broadcast %cst_26 : f32 to vector<8x128xf32>
    %93 = arith.addf %92, %91 : vector<8x128xf32>
    %94 = arith.divf %92, %93 : vector<8x128xf32>
    %95 = vector.extract_strided_slice %77 {offsets = [0, 256], sizes = [8, 128], strides = [1, 1]} : vector<8x384xf32> to vector<8x128xf32>
    %96 = vector.extract_strided_slice %78 {offsets = [0, 256], sizes = [8, 128], strides = [1, 1]} : vector<8x384xf32> to vector<8x128xf32>
    %97 = arith.addf %96, %3 : vector<8x128xf32>
    %98 = arith.mulf %86, %97 : vector<8x128xf32>
    %99 = arith.addf %95, %98 : vector<8x128xf32>
    %100 = math.tanh %99 : vector<8x128xf32>
    %cst_27 = arith.constant 1.000000e+00 : f32
    %101 = vector.broadcast %cst_27 : f32 to vector<8x128xf32>
    %102 = arith.subf %101, %94 : vector<8x128xf32>
    %103 = arith.mulf %102, %100 : vector<8x128xf32>
    %104 = arith.mulf %94, %76 : vector<8x128xf32>
    %105 = arith.addf %103, %104 : vector<8x128xf32>
    %cst_28 = arith.constant 2.000000e+00 : f32
    %106 = vector.broadcast %cst_28 : f32 to vector<8x128xf32>
    %107 = arith.cmpf ogt, %4, %106 : vector<8x128xf32>
    %108 = arith.select %107, %105, %76 : vector<8x128xi1>, vector<8x128xf32>
    %109 = vector.extract_strided_slice %12 {offsets = [24, 0], sizes = [8, 384], strides = [1, 1]} : vector<64x384xf32> to vector<8x384xf32>
    %cst_29 = arith.constant dense<0.000000e+00> : vector<8x384xf32>
    %110 = tpu.matmul %108, %0, %cst_29 {dimension_numbers = #tpu.dot_dimension_numbers<[1], [0], [0], [1], [0, 0, 1, 1], [], []>} : vector<8x128xf32>, vector<128x384xf32>, vector<8x384xf32> -> vector<8x384xf32>
    %111 = vector.extract_strided_slice %109 {offsets = [0, 0], sizes = [8, 128], strides = [1, 1]} : vector<8x384xf32> to vector<8x128xf32>
    %112 = vector.extract_strided_slice %110 {offsets = [0, 0], sizes = [8, 128], strides = [1, 1]} : vector<8x384xf32> to vector<8x128xf32>
    %113 = arith.addf %111, %112 : vector<8x128xf32>
    %114 = arith.negf %113 : vector<8x128xf32>
    %115 = math.exp %114 : vector<8x128xf32>
    %cst_30 = arith.constant 1.000000e+00 : f32
    %116 = vector.broadcast %cst_30 : f32 to vector<8x128xf32>
    %117 = arith.addf %116, %115 : vector<8x128xf32>
    %118 = arith.divf %116, %117 : vector<8x128xf32>
    %119 = vector.extract_strided_slice %109 {offsets = [0, 128], sizes = [8, 128], strides = [1, 1]} : vector<8x384xf32> to vector<8x128xf32>
    %120 = vector.extract_strided_slice %110 {offsets = [0, 128], sizes = [8, 128], strides = [1, 1]} : vector<8x384xf32> to vector<8x128xf32>
    %121 = arith.addf %119, %120 : vector<8x128xf32>
    %122 = arith.negf %121 : vector<8x128xf32>
    %123 = math.exp %122 : vector<8x128xf32>
    %cst_31 = arith.constant 1.000000e+00 : f32
    %124 = vector.broadcast %cst_31 : f32 to vector<8x128xf32>
    %125 = arith.addf %124, %123 : vector<8x128xf32>
    %126 = arith.divf %124, %125 : vector<8x128xf32>
    %127 = vector.extract_strided_slice %109 {offsets = [0, 256], sizes = [8, 128], strides = [1, 1]} : vector<8x384xf32> to vector<8x128xf32>
    %128 = vector.extract_strided_slice %110 {offsets = [0, 256], sizes = [8, 128], strides = [1, 1]} : vector<8x384xf32> to vector<8x128xf32>
    %129 = arith.addf %128, %3 : vector<8x128xf32>
    %130 = arith.mulf %118, %129 : vector<8x128xf32>
    %131 = arith.addf %127, %130 : vector<8x128xf32>
    %132 = math.tanh %131 : vector<8x128xf32>
    %cst_32 = arith.constant 1.000000e+00 : f32
    %133 = vector.broadcast %cst_32 : f32 to vector<8x128xf32>
    %134 = arith.subf %133, %126 : vector<8x128xf32>
    %135 = arith.mulf %134, %132 : vector<8x128xf32>
    %136 = arith.mulf %126, %108 : vector<8x128xf32>
    %137 = arith.addf %135, %136 : vector<8x128xf32>
    %cst_33 = arith.constant 3.000000e+00 : f32
    %138 = vector.broadcast %cst_33 : f32 to vector<8x128xf32>
    %139 = arith.cmpf ogt, %4, %138 : vector<8x128xf32>
    %140 = arith.select %139, %137, %108 : vector<8x128xi1>, vector<8x128xf32>
    %141 = vector.extract_strided_slice %12 {offsets = [32, 0], sizes = [8, 384], strides = [1, 1]} : vector<64x384xf32> to vector<8x384xf32>
    %cst_34 = arith.constant dense<0.000000e+00> : vector<8x384xf32>
    %142 = tpu.matmul %140, %0, %cst_34 {dimension_numbers = #tpu.dot_dimension_numbers<[1], [0], [0], [1], [0, 0, 1, 1], [], []>} : vector<8x128xf32>, vector<128x384xf32>, vector<8x384xf32> -> vector<8x384xf32>
    %143 = vector.extract_strided_slice %141 {offsets = [0, 0], sizes = [8, 128], strides = [1, 1]} : vector<8x384xf32> to vector<8x128xf32>
    %144 = vector.extract_strided_slice %142 {offsets = [0, 0], sizes = [8, 128], strides = [1, 1]} : vector<8x384xf32> to vector<8x128xf32>
    %145 = arith.addf %143, %144 : vector<8x128xf32>
    %146 = arith.negf %145 : vector<8x128xf32>
    %147 = math.exp %146 : vector<8x128xf32>
    %cst_35 = arith.constant 1.000000e+00 : f32
    %148 = vector.broadcast %cst_35 : f32 to vector<8x128xf32>
    %149 = arith.addf %148, %147 : vector<8x128xf32>
    %150 = arith.divf %148, %149 : vector<8x128xf32>
    %151 = vector.extract_strided_slice %141 {offsets = [0, 128], sizes = [8, 128], strides = [1, 1]} : vector<8x384xf32> to vector<8x128xf32>
    %152 = vector.extract_strided_slice %142 {offsets = [0, 128], sizes = [8, 128], strides = [1, 1]} : vector<8x384xf32> to vector<8x128xf32>
    %153 = arith.addf %151, %152 : vector<8x128xf32>
    %154 = arith.negf %153 : vector<8x128xf32>
    %155 = math.exp %154 : vector<8x128xf32>
    %cst_36 = arith.constant 1.000000e+00 : f32
    %156 = vector.broadcast %cst_36 : f32 to vector<8x128xf32>
    %157 = arith.addf %156, %155 : vector<8x128xf32>
    %158 = arith.divf %156, %157 : vector<8x128xf32>
    %159 = vector.extract_strided_slice %141 {offsets = [0, 256], sizes = [8, 128], strides = [1, 1]} : vector<8x384xf32> to vector<8x128xf32>
    %160 = vector.extract_strided_slice %142 {offsets = [0, 256], sizes = [8, 128], strides = [1, 1]} : vector<8x384xf32> to vector<8x128xf32>
    %161 = arith.addf %160, %3 : vector<8x128xf32>
    %162 = arith.mulf %150, %161 : vector<8x128xf32>
    %163 = arith.addf %159, %162 : vector<8x128xf32>
    %164 = math.tanh %163 : vector<8x128xf32>
    %cst_37 = arith.constant 1.000000e+00 : f32
    %165 = vector.broadcast %cst_37 : f32 to vector<8x128xf32>
    %166 = arith.subf %165, %158 : vector<8x128xf32>
    %167 = arith.mulf %166, %164 : vector<8x128xf32>
    %168 = arith.mulf %158, %140 : vector<8x128xf32>
    %169 = arith.addf %167, %168 : vector<8x128xf32>
    %cst_38 = arith.constant 4.000000e+00 : f32
    %170 = vector.broadcast %cst_38 : f32 to vector<8x128xf32>
    %171 = arith.cmpf ogt, %4, %170 : vector<8x128xf32>
    %172 = arith.select %171, %169, %140 : vector<8x128xi1>, vector<8x128xf32>
    %173 = vector.extract_strided_slice %12 {offsets = [40, 0], sizes = [8, 384], strides = [1, 1]} : vector<64x384xf32> to vector<8x384xf32>
    %cst_39 = arith.constant dense<0.000000e+00> : vector<8x384xf32>
    %174 = tpu.matmul %172, %0, %cst_39 {dimension_numbers = #tpu.dot_dimension_numbers<[1], [0], [0], [1], [0, 0, 1, 1], [], []>} : vector<8x128xf32>, vector<128x384xf32>, vector<8x384xf32> -> vector<8x384xf32>
    %175 = vector.extract_strided_slice %173 {offsets = [0, 0], sizes = [8, 128], strides = [1, 1]} : vector<8x384xf32> to vector<8x128xf32>
    %176 = vector.extract_strided_slice %174 {offsets = [0, 0], sizes = [8, 128], strides = [1, 1]} : vector<8x384xf32> to vector<8x128xf32>
    %177 = arith.addf %175, %176 : vector<8x128xf32>
    %178 = arith.negf %177 : vector<8x128xf32>
    %179 = math.exp %178 : vector<8x128xf32>
    %cst_40 = arith.constant 1.000000e+00 : f32
    %180 = vector.broadcast %cst_40 : f32 to vector<8x128xf32>
    %181 = arith.addf %180, %179 : vector<8x128xf32>
    %182 = arith.divf %180, %181 : vector<8x128xf32>
    %183 = vector.extract_strided_slice %173 {offsets = [0, 128], sizes = [8, 128], strides = [1, 1]} : vector<8x384xf32> to vector<8x128xf32>
    %184 = vector.extract_strided_slice %174 {offsets = [0, 128], sizes = [8, 128], strides = [1, 1]} : vector<8x384xf32> to vector<8x128xf32>
    %185 = arith.addf %183, %184 : vector<8x128xf32>
    %186 = arith.negf %185 : vector<8x128xf32>
    %187 = math.exp %186 : vector<8x128xf32>
    %cst_41 = arith.constant 1.000000e+00 : f32
    %188 = vector.broadcast %cst_41 : f32 to vector<8x128xf32>
    %189 = arith.addf %188, %187 : vector<8x128xf32>
    %190 = arith.divf %188, %189 : vector<8x128xf32>
    %191 = vector.extract_strided_slice %173 {offsets = [0, 256], sizes = [8, 128], strides = [1, 1]} : vector<8x384xf32> to vector<8x128xf32>
    %192 = vector.extract_strided_slice %174 {offsets = [0, 256], sizes = [8, 128], strides = [1, 1]} : vector<8x384xf32> to vector<8x128xf32>
    %193 = arith.addf %192, %3 : vector<8x128xf32>
    %194 = arith.mulf %182, %193 : vector<8x128xf32>
    %195 = arith.addf %191, %194 : vector<8x128xf32>
    %196 = math.tanh %195 : vector<8x128xf32>
    %cst_42 = arith.constant 1.000000e+00 : f32
    %197 = vector.broadcast %cst_42 : f32 to vector<8x128xf32>
    %198 = arith.subf %197, %190 : vector<8x128xf32>
    %199 = arith.mulf %198, %196 : vector<8x128xf32>
    %200 = arith.mulf %190, %172 : vector<8x128xf32>
    %201 = arith.addf %199, %200 : vector<8x128xf32>
    %cst_43 = arith.constant 5.000000e+00 : f32
    %202 = vector.broadcast %cst_43 : f32 to vector<8x128xf32>
    %203 = arith.cmpf ogt, %4, %202 : vector<8x128xf32>
    %204 = arith.select %203, %201, %172 : vector<8x128xi1>, vector<8x128xf32>
    %205 = vector.extract_strided_slice %12 {offsets = [48, 0], sizes = [8, 384], strides = [1, 1]} : vector<64x384xf32> to vector<8x384xf32>
    %cst_44 = arith.constant dense<0.000000e+00> : vector<8x384xf32>
    %206 = tpu.matmul %204, %0, %cst_44 {dimension_numbers = #tpu.dot_dimension_numbers<[1], [0], [0], [1], [0, 0, 1, 1], [], []>} : vector<8x128xf32>, vector<128x384xf32>, vector<8x384xf32> -> vector<8x384xf32>
    %207 = vector.extract_strided_slice %205 {offsets = [0, 0], sizes = [8, 128], strides = [1, 1]} : vector<8x384xf32> to vector<8x128xf32>
    %208 = vector.extract_strided_slice %206 {offsets = [0, 0], sizes = [8, 128], strides = [1, 1]} : vector<8x384xf32> to vector<8x128xf32>
    %209 = arith.addf %207, %208 : vector<8x128xf32>
    %210 = arith.negf %209 : vector<8x128xf32>
    %211 = math.exp %210 : vector<8x128xf32>
    %cst_45 = arith.constant 1.000000e+00 : f32
    %212 = vector.broadcast %cst_45 : f32 to vector<8x128xf32>
    %213 = arith.addf %212, %211 : vector<8x128xf32>
    %214 = arith.divf %212, %213 : vector<8x128xf32>
    %215 = vector.extract_strided_slice %205 {offsets = [0, 128], sizes = [8, 128], strides = [1, 1]} : vector<8x384xf32> to vector<8x128xf32>
    %216 = vector.extract_strided_slice %206 {offsets = [0, 128], sizes = [8, 128], strides = [1, 1]} : vector<8x384xf32> to vector<8x128xf32>
    %217 = arith.addf %215, %216 : vector<8x128xf32>
    %218 = arith.negf %217 : vector<8x128xf32>
    %219 = math.exp %218 : vector<8x128xf32>
    %cst_46 = arith.constant 1.000000e+00 : f32
    %220 = vector.broadcast %cst_46 : f32 to vector<8x128xf32>
    %221 = arith.addf %220, %219 : vector<8x128xf32>
    %222 = arith.divf %220, %221 : vector<8x128xf32>
    %223 = vector.extract_strided_slice %205 {offsets = [0, 256], sizes = [8, 128], strides = [1, 1]} : vector<8x384xf32> to vector<8x128xf32>
    %224 = vector.extract_strided_slice %206 {offsets = [0, 256], sizes = [8, 128], strides = [1, 1]} : vector<8x384xf32> to vector<8x128xf32>
    %225 = arith.addf %224, %3 : vector<8x128xf32>
    %226 = arith.mulf %214, %225 : vector<8x128xf32>
    %227 = arith.addf %223, %226 : vector<8x128xf32>
    %228 = math.tanh %227 : vector<8x128xf32>
    %cst_47 = arith.constant 1.000000e+00 : f32
    %229 = vector.broadcast %cst_47 : f32 to vector<8x128xf32>
    %230 = arith.subf %229, %222 : vector<8x128xf32>
    %231 = arith.mulf %230, %228 : vector<8x128xf32>
    %232 = arith.mulf %222, %204 : vector<8x128xf32>
    %233 = arith.addf %231, %232 : vector<8x128xf32>
    %cst_48 = arith.constant 6.000000e+00 : f32
    %234 = vector.broadcast %cst_48 : f32 to vector<8x128xf32>
    %235 = arith.cmpf ogt, %4, %234 : vector<8x128xf32>
    %236 = arith.select %235, %233, %204 : vector<8x128xi1>, vector<8x128xf32>
    %237 = vector.extract_strided_slice %12 {offsets = [56, 0], sizes = [8, 384], strides = [1, 1]} : vector<64x384xf32> to vector<8x384xf32>
    %cst_49 = arith.constant dense<0.000000e+00> : vector<8x384xf32>
    %238 = tpu.matmul %236, %0, %cst_49 {dimension_numbers = #tpu.dot_dimension_numbers<[1], [0], [0], [1], [0, 0, 1, 1], [], []>} : vector<8x128xf32>, vector<128x384xf32>, vector<8x384xf32> -> vector<8x384xf32>
    %239 = vector.extract_strided_slice %237 {offsets = [0, 0], sizes = [8, 128], strides = [1, 1]} : vector<8x384xf32> to vector<8x128xf32>
    %240 = vector.extract_strided_slice %238 {offsets = [0, 0], sizes = [8, 128], strides = [1, 1]} : vector<8x384xf32> to vector<8x128xf32>
    %241 = arith.addf %239, %240 : vector<8x128xf32>
    %242 = arith.negf %241 : vector<8x128xf32>
    %243 = math.exp %242 : vector<8x128xf32>
    %cst_50 = arith.constant 1.000000e+00 : f32
    %244 = vector.broadcast %cst_50 : f32 to vector<8x128xf32>
    %245 = arith.addf %244, %243 : vector<8x128xf32>
    %246 = arith.divf %244, %245 : vector<8x128xf32>
    %247 = vector.extract_strided_slice %237 {offsets = [0, 128], sizes = [8, 128], strides = [1, 1]} : vector<8x384xf32> to vector<8x128xf32>
    %248 = vector.extract_strided_slice %238 {offsets = [0, 128], sizes = [8, 128], strides = [1, 1]} : vector<8x384xf32> to vector<8x128xf32>
    %249 = arith.addf %247, %248 : vector<8x128xf32>
    %250 = arith.negf %249 : vector<8x128xf32>
    %251 = math.exp %250 : vector<8x128xf32>
    %cst_51 = arith.constant 1.000000e+00 : f32
    %252 = vector.broadcast %cst_51 : f32 to vector<8x128xf32>
    %253 = arith.addf %252, %251 : vector<8x128xf32>
    %254 = arith.divf %252, %253 : vector<8x128xf32>
    %255 = vector.extract_strided_slice %237 {offsets = [0, 256], sizes = [8, 128], strides = [1, 1]} : vector<8x384xf32> to vector<8x128xf32>
    %256 = vector.extract_strided_slice %238 {offsets = [0, 256], sizes = [8, 128], strides = [1, 1]} : vector<8x384xf32> to vector<8x128xf32>
    %257 = arith.addf %256, %3 : vector<8x128xf32>
    %258 = arith.mulf %246, %257 : vector<8x128xf32>
    %259 = arith.addf %255, %258 : vector<8x128xf32>
    %260 = math.tanh %259 : vector<8x128xf32>
    %cst_52 = arith.constant 1.000000e+00 : f32
    %261 = vector.broadcast %cst_52 : f32 to vector<8x128xf32>
    %262 = arith.subf %261, %254 : vector<8x128xf32>
    %263 = arith.mulf %262, %260 : vector<8x128xf32>
    %264 = arith.mulf %254, %236 : vector<8x128xf32>
    %265 = arith.addf %263, %264 : vector<8x128xf32>
    %cst_53 = arith.constant 7.000000e+00 : f32
    %266 = vector.broadcast %cst_53 : f32 to vector<8x128xf32>
    %267 = arith.cmpf ogt, %4, %266 : vector<8x128xf32>
    %268 = arith.select %267, %265, %236 : vector<8x128xi1>, vector<8x128xf32>
    %c0_54 = arith.constant 0 : index
    %c0_55 = arith.constant 0 : index
    %269 = vector.load %arg8[%c0_54, %c0_55] : memref<8x128xf32, #tpu.memory_space<vmem>>, vector<8x128xf32>
    tpu.vector_store %arg8[%c0_54, %c0_55], %268 {strides = array<i32>} : memref<8x128xf32, #tpu.memory_space<vmem>>, vector<8x128xf32>,
    return
  }
  func.func @transform_0(%arg0: i32) -> (i32, i32, i32) {
    %c0_i32 = arith.constant 0 : i32
    %c0_i32_0 = arith.constant 0 : i32
    %c0_i32_1 = arith.constant 0 : i32
    return %c0_i32, %arg0, %c0_i32_0 : i32, i32, i32
  }
  func.func @transform_1(%arg0: i32) -> (i32, i32) {
    %c0_i32 = arith.constant 0 : i32
    %c0_i32_0 = arith.constant 0 : i32
    return %arg0, %c0_i32 : i32, i32
  }
  func.func @transform_2(%arg0: i32) -> (i32, i32) {
    %c0_i32 = arith.constant 0 : i32
    %c0_i32_0 = arith.constant 0 : i32
    return %arg0, %c0_i32 : i32, i32
  }
  func.func @transform_3(%arg0: i32) -> (i32, i32) {
    %c0_i32 = arith.constant 0 : i32
    %c0_i32_0 = arith.constant 0 : i32
    %c0_i32_1 = arith.constant 0 : i32
    return %c0_i32, %c0_i32_0 : i32, i32
  }
  func.func @transform_4(%arg0: i32) -> (i32, i32) {
    %c0_i32 = arith.constant 0 : i32
    %c0_i32_0 = arith.constant 0 : i32
    %c0_i32_1 = arith.constant 0 : i32
    return %c0_i32, %c0_i32_0 : i32, i32
  }
  func.func @transform_5(%arg0: i32) -> (i32, i32) {
    %c0_i32 = arith.constant 0 : i32
    %c0_i32_0 = arith.constant 0 : i32
    %c0_i32_1 = arith.constant 0 : i32
    return %c0_i32, %c0_i32_0 : i32, i32
  }
  func.func @transform_6(%arg0: i32) -> (i32, i32) {
    %c0_i32 = arith.constant 0 : i32
    %c0_i32_0 = arith.constant 0 : i32
    %c0_i32_1 = arith.constant 0 : i32
    return %c0_i32, %c0_i32_0 : i32, i32
  }
  func.func @transform_7(%arg0: i32) -> (i32, i32) {
    %c0_i32 = arith.constant 0 : i32
    %c0_i32_0 = arith.constant 0 : i32
    return %arg0, %c0_i32 : i32, i32
  }
}

</mosaic_0001>

<bundles_post_ra>
// kernel: lstur_forward.1
= control target key start
LH: loop header
LB: loop body
LE: loop exit
PB: predicated region body
PF: predicated region fallthrough
CT: control target
= control target key end

     0   :  { %s3357_s24 = smov 0   ;;  %s3359_s25 = smov 0   ;;  %s4175_s0 = inlined_call_operand.vmem [shape: f32[8,16,128], index: 0, kind: input, shape index: {}]   ;;  %s4176_s1 = inlined_call_operand.vmem [shape: f32[16,128], index: 1, kind: input, shape index: {}]   ;;  %s4177_s2 = inlined_call_operand.vmem [shape: f32[16,128], index: 2, kind: input, shape index: {}]   ;;  %s4178_s3 = inlined_call_operand.vmem [shape: f32[128,384], index: 3, kind: input, shape index: {}]   ;;  %s4179_s4 = inlined_call_operand.vmem [shape: f32[1,384], index: 4, kind: input, shape index: {}]   ;;  %s4180_s5 = inlined_call_operand.vmem [shape: f32[128,384], index: 5, kind: input, shape index: {}]   ;;  %s4181_s6 = inlined_call_operand.vmem [shape: f32[1,128], index: 6, kind: input, shape index: {}]   ;;  %s4182_s7 = inlined_call_operand.vmem [shape: f32[16,128], index: 7, kind: output, shape index: {}]  }
   0x1   :  { %s3361_s26 = smov 0  }
   0x2 LB: > { %s2125_s27 = sadd.s32 4294967295, %s3312_s26   ;;  %s3374_s28 = sadd.s32 1, %s3312_s26   ;;  %s3312_s26 = sphi %s3361_s26, %s4186_s26   ;;  %s3308_s25 = sphi %s3359_s25, %s4185_s25   ;;  %s3304_s24 = sphi %s3357_s24, %s4184_s24  }
   0x3   : > { %s21_s29 = ssub.s32 %s3312_s26, %s3374_s28  ;;  %s24_s30 = sadd.s32 1, %s3308_s25 }
   0x4   : > { %p22_p0 = scmp.eq.s32.totalorder %s21_s29, 0  ;;  %p31_p1 = scmp.ne.s32.totalorder %s3308_s25, %s3304_s24 }
   0x5   : > { %p32_p2 = scmp.eq.s32.totalorder %s3312_s26, 0  ;;  %p2128_p4 = scmp.ge.s32.totalorder %s3312_s26, 2 }
   0x6   : > { %s3383_s8 = scalar_select %p22_p0, %s3308_s25, %s24_s30  }
   0x7   : > { %p33_p3 = por %p32_p2, %p31_p1  ;;  %231 = sbr.rel (%p2128_p4) target bundleno = 22 (0x16), region = 32 }
   0xe   : > { %234 = sbr.rel (!%p33_p3) target bundleno = 22 (0x16), region = 36  ;;  %s236_s9 = sand.u32 (%p33_p3), 1, %s3308_s25  }
   0xf   : > { %s2130_s10 = sshll.u32 (%p33_p3), %s3312_s26, 3  ;;  %s2129_s11 = sshll.u32 (%p33_p3), %s236_s9, 6 }
  0x10   : > { %s240_s14 = scalar_lea.vmem (%p33_p3), %s4175_s0, %s2130_s10  ;;  %s238_s15 = scalar_lea.vmem (%p33_p3), [#allocation2], %s2129_s11 }
  0x11   : > { %v282_v0 = vld [vmem:[%s240_s14] sm:$0xff] (%p33_p3)  ;;  %v284_v1 = vld [vmem:[%s240_s14 + $0x10] sm:$0xff] (%p33_p3) }
  0x12   : > { %v286_v2 = vld [vmem:[%s240_s14 + $0x20] sm:$0xff] (%p33_p3)  ;;  %283 = vst [vmem:[%s238_s15] sm:$0xff] (%p33_p3), %v282_v0  ;;  %285 = vst [vmem:[%s238_s15 + $0x8] sm:$0xff] (%p33_p3), %v284_v1  ;;  %v288_v3 = vld [vmem:[%s240_s14 + $0x30] sm:$0xff] (%p33_p3) }
  0x13   : > { %287 = vst [vmem:[%s238_s15 + $0x10] sm:$0xff] (%p33_p3), %v286_v2  ;;  %v290_v4 = vld [vmem:[%s240_s14 + $0x40] sm:$0xff] (%p33_p3)  ;;  %v292_v5 = vld [vmem:[%s240_s14 + $0x50] sm:$0xff] (%p33_p3)  ;;  %289 = vst [vmem:[%s238_s15 + $0x18] sm:$0xff] (%p33_p3), %v288_v3 }
  0x14   : > { %291 = vst [vmem:[%s238_s15 + $0x20] sm:$0xff] (%p33_p3), %v290_v4  ;;  %293 = vst [vmem:[%s238_s15 + $0x28] sm:$0xff] (%p33_p3), %v292_v5  ;;  %v294_v6 = vld [vmem:[%s240_s14 + $0x60] sm:$0xff] (%p33_p3)  ;;  %v296_v7 = vld [vmem:[%s240_s14 + $0x70] sm:$0xff] (%p33_p3) }
  0x15   : > { %295 = vst [vmem:[%s238_s15 + $0x30] sm:$0xff] %v294_v6  ;;  %297 = vst [vmem:[%s238_s15 + $0x38] sm:$0xff] %v296_v7 }
  0x16 PF: > { %p2131_p5 = scmp.ge.s32.totalorder %s3312_s26, 1  ;;  %p316_p6 = scmp.lt.s32.totalorder %s3312_s26, 3 }
  0x18   : > { %p317_p7 = pnand %p2131_p5, %p316_p6 }
  0x19   : > { %v439_v8 = vld [vmem:[%s4178_s3 + $0x8] sm:$0xff] (!%p317_p7)  ;;  %v442_v9 = vld [vmem:[%s4178_s3 + $0x20] sm:$0xff] (!%p317_p7)  ;;  %v441_v12 = vld [vmem:[%s4178_s3 + $0x18] sm:$0xff] (!%p317_p7)  ;;  %v3314_v15 = vmov (!%p317_p7), 0.0   ;;  %s323_s19 = sand.u32 (!%p317_p7), 1, %s3304_s24   ;;  %p3691_p8 = scmp.lt.s32.totalorder (!%p317_p7), %s2125_s27, 1 }
  0x1a   : > { %320 = sbr.rel (%p317_p7) target bundleno = 2173 (0x87d), region = 82  ;;  %v438_v10 = vld [vmem:[%s4178_s3] sm:$0xff] (!%p317_p7)  ;;  %v2639_v11 = vpack.c.bf16 (!%p317_p7), %v442_v9, %v439_v8  ;;  %v445_v13 = vld [vmem:[%s4178_s3 + $0x38] sm:$0xff] (!%p317_p7)  ;;  %v448_v14 = vld [vmem:[%s4178_s3 + $0x50] sm:$0xff] (!%p317_p7)  ;;  %567 = vmatprep.mubr.f32.mxu0 (!%p317_p7), %v3314_v15  ;;  %s2132_s11 = sshll.u32 (!%p317_p7), %s323_s19, 6  ;;  %vm3316_vm0 = vmmov (!%p317_p7), 0  }
  0x1b   : > { %v2641_v16 = vpack.c.bf16 (!%p317_p7), %v441_v12, %v438_v10  ;;  %v2643_v17 = vpack.c.bf16 (!%p317_p7), %v448_v14, %v445_v13  ;;  %v444_v18 = vld [vmem:[%s4178_s3 + $0x30] sm:$0xff] (!%p317_p7)  ;;  %v447_v19 = vld [vmem:[%s4178_s3 + $0x48] sm:$0xff] (!%p317_p7)  ;;  %v454_v21 = vld [vmem:[%s4178_s3 + $0x80] sm:$0xff] (!%p317_p7)  ;;  %s3467_s14 = scalar_lea.vmem (!%p317_p7), [#allocation2], %s2132_s11 }
  0x1c   : > { %v451_v20 = vld [vmem:[%s4178_s3 + $0x68] sm:$0xff] (!%p317_p7)  ;;  %2640 = vmatprep.subr.bf16.mxu0 (!%p317_p7), %v2639_v11  ;;  %v2645_v22 = vpack.c.bf16 (!%p317_p7), %v447_v19, %v444_v18  ;;  %v450_v24 = vld [vmem:[%s4178_s3 + $0x60] sm:$0xff] (!%p317_p7)  ;;  %v453_v25 = vld [vmem:[%s4178_s3 + $0x78] sm:$0xff] (!%p317_p7) }
  0x1d   : > { %2642 = vmatpush1.bf16.msra.mxu0 (!%p317_p7), %v2641_v16  ;;  %v2647_v23 = vpack.c.bf16 (!%p317_p7), %v454_v21, %v451_v20  ;;  %v457_v26 = vld [vmem:[%s4178_s3 + $0x98] sm:$0xff] (!%p317_p7)  ;;  %v460_v27 = vld [vmem:[%s4178_s3 + $0xb0] sm:$0xff] (!%p317_p7)  ;;  %v2649_v28 = vpack.c.bf16 (!%p317_p7), %v453_v25, %v450_v24  ;;  %v459_v31 = vld [vmem:[%s4178_s3 + $0xa8] sm:$0xff] (!%p317_p7) }
  0x1e   : > { %2644 = vmatprep.subr.bf16.mxu0 (!%p317_p7), %v2643_v17  ;;  %v456_v29 = vld [vmem:[%s4178_s3 + $0x90] sm:$0xff] (!%p317_p7)  ;;  %v2651_v30 = vpack.c.bf16 (!%p317_p7), %v460_v27, %v457_v26  ;;  %v443_v33 = vld [vmem:[%s4178_s3 + $0x28] sm:$0xff] (!%p317_p7)  ;;  %v466_v35 = vld [vmem:[%s4178_s3 + $0xe0] sm:$0xff] (!%p317_p7) }
  0x1f   : > { %v440_v32 = vld [vmem:[%s4178_s3 + $0x10] sm:$0xff] (!%p317_p7)  ;;  %v463_v34 = vld [vmem:[%s4178_s3 + $0xc8] sm:$0xff] (!%p317_p7)  ;;  %v446_v37 = vld [vmem:[%s4178_s3 + $0x40] sm:$0xff] (!%p317_p7)  ;;  %v2653_v39 = vpack.c.bf16 (!%p317_p7), %v459_v31, %v456_v29 }
  0x20   : > { %v2671_v36 = vpack.c.bf16 (!%p317_p7), %v443_v33, %v440_v32  ;;  %v449_v38 = vld [vmem:[%s4178_s3 + $0x58] sm:$0xff] (!%p317_p7)  ;;  %v462_v40 = vld [vmem:[%s4178_s3 + $0xc0] sm:$0xff] (!%p317_p7)  ;;  %v2655_v42 = vpack.c.bf16 (!%p317_p7), %v466_v35, %v463_v34  ;;  %v452_v45 = vld [vmem:[%s4178_s3 + $0x70] sm:$0xff] (!%p317_p7) }
  0x21   : > { %2646 = vmatpush1.bf16.msra.mxu0 %v2645_v22  ;;  %v2675_v41 = vpack.c.bf16 %v449_v38, %v446_v37  ;;  %v465_v43 = vld [vmem:[%s4178_s3 + $0xd8] sm:$0xff]  ;;  %v3470_v44 = vld [vmem:[%s3467_s14] sm:$0xff]  ;;  %v472_v47 = vld [vmem:[%s4178_s3 + $0x110] sm:$0xff]  ;;  %s4188_s27 = smov (!%p3691_p8, %s2125_s27), 1 }
  0x22   : > { %2648 = vmatprep.subr.bf16.mxu0 %v2647_v23  ;;  %2672 = vmatprep.subr.bf16.mxu1 %v2671_v36  ;;  %v469_v46 = vld [vmem:[%s4178_s3 + $0xf8] sm:$0xff]  ;;  %v455_v48 = vld [vmem:[%s4178_s3 + $0x88] sm:$0xff]  ;;  %v2657_v50 = vpack.c.bf16 %v465_v43, %v462_v40  ;;  %v458_v51 = vld [vmem:[%s4178_s3 + $0xa0] sm:$0xff]  ;;  %s3753_s10 = sshll.u32 %s4188_s27, 3 }
  0x23   : > { %2674 = vmatpush3.bf16.msra.mxu1 %v2671_v36  ;;  %2347 = vmatprep.mubr.f32.mxu1 %v3470_v44  ;;  %v2679_v49 = vpack.c.bf16 %v455_v48, %v452_v45  ;;  %v461_v52 = vld [vmem:[%s4178_s3 + $0xb8] sm:$0xff]  ;;  %v2659_v53 = vpack.c.bf16 %v472_v47, %v469_v46  ;;  %v468_v54 = vld [vmem:[%s4178_s3 + $0xf0] sm:$0xff]  ;;  %v471_v55 = vld [vmem:[%s4178_s3 + $0x108] sm:$0xff]  ;;  %v3315_v48 = vmov 0.0|0.0   ;;  %s364_s16 = scalar_lea.vmem %s4176_s1, %s3753_s10  ;;  %s368_s12 = scalar_lea.vmem %s4177_s2, %s3753_s10 }
  0x24   : > { %2676 = vmatprep.subr.bf16.mxu1 %v2675_v41  ;;  %v475_v56 = vld [vmem:[%s4178_s3 + $0x128] sm:$0xff]  ;;  %v478_v57 = vld [vmem:[%s4178_s3 + $0x140] sm:$0xff]  ;;  %v2683_v58 = vpack.c.bf16 %v461_v52, %v458_v51  ;;  %v464_v59 = vld [vmem:[%s4178_s3 + $0xd0] sm:$0xff]  ;;  %v2661_v61 = vpack.c.bf16 %v471_v55, %v468_v54  ;;  %s372_s15 = scalar_lea.vmem %s4182_s7, %s3753_s10 }
  0x25   : > { %2650 = vmatpush1.bf16.msra.mxu0 %v2649_v28  ;;  %v467_v60 = vld [vmem:[%s4178_s3 + $0xe8] sm:$0xff]  ;;  %v2663_v62 = vpack.c.bf16 %v478_v57, %v475_v56  ;;  %v474_v63 = vld [vmem:[%s4178_s3 + $0x120] sm:$0xff]  ;;  %v477_v0 = vld [vmem:[%s4178_s3 + $0x138] sm:$0xff] }
  0x26   : > { %2652 = vmatprep.subr.bf16.mxu0 %v2651_v30  ;;  %v481_v1 = vld [vmem:[%s4178_s3 + $0x158] sm:$0xff]  ;;  %v484_v2 = vld [vmem:[%s4178_s3 + $0x170] sm:$0xff]  ;;  %v2687_v3 = vpack.c.bf16 %v467_v60, %v464_v59  ;;  %v470_v4 = vld [vmem:[%s4178_s3 + $0x100] sm:$0xff]  ;;  %v2665_v6 = vpack.c.bf16 %v477_v0, %v474_v63 }
  0x27   : > { %2678 = vmatpush3.bf16.msra.mxu1 %v2675_v41  ;;  %v473_v5 = vld [vmem:[%s4178_s3 + $0x118] sm:$0xff]  ;;  %v2667_v7 = vpack.c.bf16 %v484_v2, %v481_v1  ;;  %v480_v8 = vld [vmem:[%s4178_s3 + $0x150] sm:$0xff]  ;;  %v483_v9 = vld [vmem:[%s4178_s3 + $0x168] sm:$0xff] }
  0x28   : > { %2680 = vmatprep.subr.bf16.mxu1 %v2679_v49  ;;  %v374_v10 = vld [vmem:[%s4180_s5 + $0x8] sm:$0xff]  ;;  %v377_v11 = vld [vmem:[%s4180_s5 + $0x20] sm:$0xff]  ;;  %v2691_v12 = vpack.c.bf16 %v473_v5, %v470_v4  ;;  %v476_v13 = vld [vmem:[%s4178_s3 + $0x130] sm:$0xff]  ;;  %v2669_v16 = vpack.c.bf16 %v483_v9, %v480_v8 }
  0x29   : > { %2654 = vmatpush1.bf16.msra.mxu0 %v2653_v39  ;;  %v479_v14 = vld [vmem:[%s4178_s3 + $0x148] sm:$0xff]  ;;  %v3545_v17 = vpack.c.bf16 %v377_v11, %v374_v10  ;;  %v373_v18 = vld [vmem:[%s4180_s5] sm:$0xff]  ;;  %v376_v19 = vld [vmem:[%s4180_s5 + $0x18] sm:$0xff] }
  0x2a   : > { %2656 = vmatprep.subr.bf16.mxu0 %v2655_v42  ;;  %v380_v20 = vld [vmem:[%s4180_s5 + $0x38] sm:$0xff]  ;;  %v383_v21 = vld [vmem:[%s4180_s5 + $0x50] sm:$0xff]  ;;  %v2695_v22 = vpack.c.bf16 %v479_v14, %v476_v13  ;;  %v482_v23 = vld [vmem:[%s4178_s3 + $0x160] sm:$0xff]  ;;  %v3565_v25 = vpack.c.bf16 %v376_v19, %v373_v18 }
  0x2b   : > { %2682 = vmatpush3.bf16.msra.mxu1 %v2679_v49  ;;  %v485_v24 = vld [vmem:[%s4178_s3 + $0x178] sm:$0xff]  ;;  %v3568_v26 = vpack.c.bf16 %v383_v21, %v380_v20  ;;  %v379_v27 = vld [vmem:[%s4180_s5 + $0x30] sm:$0xff]  ;;  %v382_v28 = vld [vmem:[%s4180_s5 + $0x48] sm:$0xff] }
  0x2c   : > { %2684 = vmatprep.subr.bf16.mxu1 %v2683_v58  ;;  %v386_v29 = vld [vmem:[%s4180_s5 + $0x68] sm:$0xff]  ;;  %v389_v30 = vld [vmem:[%s4180_s5 + $0x80] sm:$0xff]  ;;  %v2699_v31 = vpack.c.bf16 %v485_v24, %v482_v23  ;;  %v3586_v33 = vpack.c.bf16 %v382_v28, %v379_v27  ;;  %v388_v36 = vld [vmem:[%s4180_s5 + $0x78] sm:$0xff] }
  0x2d   : > { %2658 = vmatpush1.bf16.msra.mxu0 %v2657_v50  ;;  %v431_v32 = vld [vmem:[%s3467_s14 + $0x8] sm:$0xff]  ;;  %v3589_v34 = vpack.c.bf16 %v389_v30, %v386_v29  ;;  %v385_v35 = vld [vmem:[%s4180_s5 + $0x60] sm:$0xff]  ;;  %v392_v37 = vld [vmem:[%s4180_s5 + $0x98] sm:$0xff] }
  0x2e   : > { %2660 = vmatprep.subr.bf16.mxu0 %v2659_v53  ;;  %v395_v38 = vld [vmem:[%s4180_s5 + $0xb0] sm:$0xff]  ;;  %v378_v40 = vld [vmem:[%s4180_s5 + $0x28] sm:$0xff]  ;;  %v3612_v42 = vpack.c.bf16 %v388_v36, %v385_v35  ;;  %v401_v47 = vld [vmem:[%s4180_s5 + $0xe0] sm:$0xff] }
  0x2f   : > { %2686 = vmatpush3.bf16.msra.mxu1 %v2683_v58  ;;  %v375_v39 = vld [vmem:[%s4180_s5 + $0x10] sm:$0xff]  ;;  %v3615_v43 = vpack.c.bf16 %v395_v38, %v392_v37  ;;  %v394_v45 = vld [vmem:[%s4180_s5 + $0xa8] sm:$0xff]  ;;  %v381_v50 = vld [vmem:[%s4180_s5 + $0x40] sm:$0xff] }
  0x30   : > { %2688 = vmatprep.subr.bf16.mxu1 %v2687_v3  ;;  %v432_v41 = vld [vmem:[%s3467_s14 + $0x10] sm:$0xff]  ;;  %v398_v46 = vld [vmem:[%s4180_s5 + $0xc8] sm:$0xff]  ;;  %v3630_v49 = vpack.c.bf16 %v378_v40, %v375_v39  ;;  %v384_v51 = vld [vmem:[%s4180_s5 + $0x58] sm:$0xff] }
  0x31   : > { %2662 = vmatpush1.bf16.msra.mxu0 %v2661_v61  ;;  %v433_v52 = vld [vmem:[%s3467_s14 + $0x18] sm:$0xff]  ;;  %v3644_v54 = vpack.c.bf16 %v401_v47, %v398_v46  ;;  %v397_v55 = vld [vmem:[%s4180_s5 + $0xc0] sm:$0xff]  ;;  %v407_v58 = vld [vmem:[%s4180_s5 + $0x110] sm:$0xff]  ;;  %v3659_v59 = vpack.c.bf16 %v384_v51, %v381_v50 }
  0x32   : > { %2664 = vmatprep.subr.bf16.mxu0 %v2663_v62  ;;  %v400_v56 = vld [vmem:[%s4180_s5 + $0xd8] sm:$0xff]  ;;  %v387_v60 = vld [vmem:[%s4180_s5 + $0x70] sm:$0xff]  ;;  %v390_v61 = vld [vmem:[%s4180_s5 + $0x88] sm:$0xff] }
  0x33   : > { %2690 = vmatpush3.bf16.msra.mxu1 %v2687_v3  ;;  %v404_v57 = vld [vmem:[%s4180_s5 + $0xf8] sm:$0xff]  ;;  %v434_v62 = vld [vmem:[%s3467_s14 + $0x20] sm:$0xff]  ;;  %v3671_v63 = vpack.c.bf16 %v400_v56, %v397_v55  ;;  %v403_v1 = vld [vmem:[%s4180_s5 + $0xf0] sm:$0xff]  ;;  %v3695_v5 = vpack.c.bf16 %v390_v61, %v387_v60 }
  0x34   : > { %2692 = vmatprep.subr.bf16.mxu1 %v2691_v12  ;;  %v3674_v0 = vpack.c.bf16 %v407_v58, %v404_v57  ;;  %v406_v2 = vld [vmem:[%s4180_s5 + $0x108] sm:$0xff]  ;;  %v413_v4 = vld [vmem:[%s4180_s5 + $0x140] sm:$0xff]  ;;  %v436_v10 = vld [vmem:[%s3467_s14 + $0x30] sm:$0xff] }
  0x35   : > { %2666 = vmatpush1.bf16.msra.mxu0 %v2665_v6  ;;  %v410_v3 = vld [vmem:[%s4180_s5 + $0x128] sm:$0xff]  ;;  %v393_v6 = vld [vmem:[%s4180_s5 + $0xa0] sm:$0xff]  ;;  %v3707_v9 = vpack.c.bf16 %v406_v2, %v403_v1  ;;  %v412_v13 = vld [vmem:[%s4180_s5 + $0x138] sm:$0xff] }
  0x36   : > { %2668 = vmatprep.subr.bf16.mxu0 %v2667_v7  ;;  %v396_v7 = vld [vmem:[%s4180_s5 + $0xb8] sm:$0xff]  ;;  %v435_v8 = vld [vmem:[%s3467_s14 + $0x28] sm:$0xff]  ;;  %v3711_v11 = vpack.c.bf16 %v413_v4, %v410_v3  ;;  %v399_v19 = vld [vmem:[%s4180_s5 + $0xd0] sm:$0xff] }
  0x37   : > { %2694 = vmatpush3.bf16.msra.mxu1 %v2691_v12  ;;  %v409_v12 = vld [vmem:[%s4180_s5 + $0x120] sm:$0xff]  ;;  %v416_v14 = vld [vmem:[%s4180_s5 + $0x158] sm:$0xff]  ;;  %v3730_v18 = vpack.c.bf16 %v396_v7, %v393_v6  ;;  %v402_v20 = vld [vmem:[%s4180_s5 + $0xe8] sm:$0xff] }
  0x38   : > { %2696 = vmatprep.subr.bf16.mxu1 %v2695_v22  ;;  %v3741_v21 = vpack.c.bf16 %v412_v13, %v409_v12  ;;  %v415_v24 = vld [vmem:[%s4180_s5 + $0x150] sm:$0xff]  ;;  %v418_v27 = vld [vmem:[%s4180_s5 + $0x168] sm:$0xff]  ;;  %v3756_v28 = vpack.c.bf16 %v402_v20, %v399_v19  ;;  %v405_v29 = vld [vmem:[%s4180_s5 + $0x100] sm:$0xff] }
  0x39   : > { %2670 = vmatpush1.bf16.msra.mxu0 %v2669_v16  ;;  %v419_v16 = vld [vmem:[%s4180_s5 + $0x170] sm:$0xff]  ;;  %v408_v30 = vld [vmem:[%s4180_s5 + $0x118] sm:$0xff]  ;;  %v414_v36 = vld [vmem:[%s4180_s5 + $0x148] sm:$0xff] }
  0x3a   : > { %2704 = vmatprep.subr.bf16.mxu0 %v3545_v17  ;;  %v3745_v23 = vpack.c.bf16 %v419_v16, %v416_v14  ;;  %v411_v35 = vld [vmem:[%s4180_s5 + $0x130] sm:$0xff]  ;;  %v3788_v37 = vld [vmem:[%s364_s16] sm:$0xff]  ;;  %v420_v40 = vld [vmem:[%s4180_s5 + $0x178] sm:$0xff] }
  0x3b   : > { %2698 = vmatpush3.bf16.msra.mxu1 %v2695_v22  ;;  %v437_v22 = vld [vmem:[%s3467_s14 + $0x38] sm:$0xff]  ;;  %v3792_v38 = vpack.c.bf16 %v414_v36, %v411_v35  ;;  %v417_v39 = vld [vmem:[%s4180_s5 + $0x160] sm:$0xff] }
  0x3c   : > { %568 = vmatmul.mubr.f32.vlgmr.msra.gmra.mrb[0].mxu0 %v3470_v44  ;;  %2700 = vmatprep.subr.bf16.mxu1 %v2699_v31  ;;  %v391_v44 = vld [vmem:[%s4180_s5 + $0x90] sm:$0xff]  ;;  %v486_v47 = vld [vmem:[%s4179_s4] sm:$0x7] }
  0x3d   : > { %2706 = vmatpush1.bf16.msra.mxu0 %v3565_v25  ;;  %573 = vmatprep.mubr.f32.mxu0 %v3314_v15  ;;  %v3641_v53 = vpack.c.bf16 %v394_v45, %v391_v44  ;;  %v488_v44 = vlaneseq }
  0x3e   : > { %2708 = vmatprep.subr.bf16.mxu0 %v3568_v26 }
  0x3f   : > { %2702 = vmatpush3.bf16.msra.mxu1 %v2699_v31  ;;  %v3769_v31 = vpack.c.bf16 %v418_v27, %v415_v24  ;;  %v489_v45 = vshrl.u32 %v488_v44, 7 }
  0x40   : > { %574 = vmatmul.mubr.f32.gmra.mrb[2].mxu0 %v431_v32  ;;  %2735 = vmatprep.subr.bf16.mxu1 %v3315_v48 }
  0x41   : > { %2710 = vmatpush1.bf16.msra.mxu0 %v3586_v33  ;;  %579 = vmatprep.mubr.f32.mxu0 %v3314_v15  ;;  %v498_v46 = vsub.s32 2, %v489_v45 }
  0x42   : > { %2712 = vmatprep.subr.bf16.mxu0 %v3589_v34  ;;  %2348 = vmatmul.mubr.f32.vlgmr.msra.gmra.mrb[0].mxu1 %v431_v32  ;;  %v3777_v32 = vpack.c.bf16 %v408_v30, %v405_v29 }
  0x43   : > { %2737 = vmatpush3.bf16.msra.mxu1 %v3630_v49  ;;  %2350 = vmatprep.mubr.f32.mxu1 %v432_v41  ;;  %v499_v50 = vrot.slane %v486_v47, %v498_v46 }
  0x44   : > { %580 = vmatmul.mubr.f32.gmra.mrb[4].mxu0 %v432_v41  ;;  %2738 = vmatprep.subr.bf16.mxu1 %v3315_v48  ;;  %v3806_v41 = vpack.c.bf16 %v420_v40, %v417_v39  ;;  %v3870_v39 = vld [vmem:[%s4181_s6] ss:$0 sm:$0xff] }
  0x45   : > { %2714 = vmatpush1.bf16.msra.mxu0 %v3612_v42  ;;  %585 = vmatprep.mubr.f32.mxu0 %v3314_v15 }
  0x46   : > { %2716 = vmatprep.subr.bf16.mxu0 %v3615_v43  ;;  %2351 = vmatmul.mubr.f32.gmra.mrb[2].mxu1 %v433_v52 }
  0x47   : > { %2740 = vmatpush3.bf16.msra.mxu1 %v3659_v59  ;;  %2353 = vmatprep.mubr.f32.mxu1 %v434_v62 }
  0x48   : > { %586 = vmatmul.mubr.f32.gmra.mrb[6].mxu0 %v433_v52  ;;  %2741 = vmatprep.subr.bf16.mxu1 %v3315_v48 }
  0x49   : > { %2718 = vmatpush1.bf16.msra.mxu0 %v3641_v53  ;;  %591 = vmatprep.mubr.f32.mxu0 %v3314_v15 }
  0x4a   : > { %2720 = vmatprep.subr.bf16.mxu0 %v3644_v54  ;;  %2354 = vmatmul.mubr.f32.gmra.mrb[4].mxu1 %v435_v8 }
  0x4b   : > { %2743 = vmatpush3.bf16.msra.mxu1 %v3695_v5  ;;  %2356 = vmatprep.mubr.f32.mxu1 %v436_v10 }
  0x4c   : > { %592 = vmatmul.mubr.f32.gmra.mrb[8].mxu0 %v434_v62  ;;  %2744 = vmatprep.subr.bf16.mxu1 %v3315_v48 }
  0x4d   : > { %2722 = vmatpush1.bf16.msra.mxu0 %v3671_v63  ;;  %597 = vmatprep.mubr.f32.mxu0 %v3314_v15 }
  0x4e   : > { %2724 = vmatprep.subr.bf16.mxu0 %v3674_v0  ;;  %2357 = vmatmul.mubr.f32.gmra.mrb[6].mxu1 %v437_v22 }
  0x4f   : > { %2746 = vmatpush3.bf16.msra.mxu1 %v3730_v18  ;;  %2391 = vmatprep.mubr.msk.f32.mxu1 %vm3316_vm0, %v3314_v15 }
  0x50   : > { %598 = vmatmul.mubr.f32.gmra.mrb[10].mxu0 %v435_v8  ;;  %2747 = vmatprep.subr.bf16.mxu1 %v3315_v48  ;;  %v490_v8 = vsub.s32 0, %v489_v45 }
  0x51   : > { %2726 = vmatpush1.bf16.msra.mxu0 %v3707_v9  ;;  %603 = vmatprep.mubr.f32.mxu0 %v3314_v15 }
  0x52   : > { %2728 = vmatprep.subr.bf16.mxu0 %v3711_v11  ;;  %v3861_v12 = vrot.slane %v486_v47, %v490_v8 }
  0x53   : > { %2749 = vmatpush3.bf16.msra.mxu1 %v3756_v28 }
  0x54   : > { %604 = vmatmul.mubr.f32.gmra.mrb[12].mxu0 %v436_v10  ;;  %2750 = vmatprep.subr.bf16.mxu1 %v3315_v48  ;;  %v494_v10 = vsub.s32 1, %v489_v45 }
  0x55   : > { %2730 = vmatpush1.bf16.msra.mxu0 %v3741_v21  ;;  %609 = vmatprep.mubr.f32.mxu0 %v3314_v15 }
  0x56   : > { %2732 = vmatprep.subr.bf16.mxu0 %v3745_v23  ;;  %v3863_v14 = vrot.slane %v486_v47, %v494_v10 }
  0x57   : > { %2752 = vmatpush3.bf16.msra.mxu1 %v3777_v32 }
  0x58   : > { %610 = vmatmul.mubr.f32.gmra.mrb[14].mxu0 %v437_v22  ;;  %2753 = vmatprep.subr.bf16.mxu1 %v3315_v48 }
  0x59   : > { %2734 = vmatpush1.bf16.msra.mxu0 %v3769_v31  ;;  %785 = vmatprep.mubr.f32.mxu0 %v3314_v15 }
  0x5a   : > { %2760 = vmatprep.subr.bf16.mxu0 %v3545_v17 }
  0x5b   : > { %2755 = vmatpush3.bf16.msra.mxu1 %v3792_v38 }
  0x5c   : > { %786 = vmatmul.mubr.f32.vlgmr.msra.gmra.mrb[0].mxu0 %v3788_v37  ;;  %2756 = vmatprep.subr.bf16.mxu1 %v3315_v48 }
  0x5d   : > { %2762 = vmatpush1.bf16.msra.mxu0 %v3565_v25  ;;  %950 = vmatprep.mubr.f32.mxu0 %v3314_v15 }
  0x5e   : > { %2764 = vmatprep.subr.bf16.mxu0 %v3568_v26 }
  0x5f   : > { %2758 = vmatpush3.bf16.msra.mxu1 %v3806_v41 }
  0x60   : > { %2791 = vmatprep.subr.bf16.mxu1 %v3315_v48 }
  0x61   : > { %2766 = vmatpush1.bf16.msra.mxu0 %v3586_v33 }
  0x62   : > { %2768 = vmatprep.subr.bf16.mxu0 %v3589_v34  ;;  %2392 = vmatmul.mubr.f32.vlgmr.msra.gmra.mrb[8].mxu1 %v3788_v37 }
  0x63   : > { %2793 = vmatpush3.bf16.msra.mxu1 %v3630_v49  ;;  %2426 = vmatprep.mubr.msk.f32.mxu1 %vm3316_vm0, %v3314_v15 }
  0x64   : > { %2794 = vmatprep.subr.bf16.mxu1 %v3315_v48 }
  0x65   : > { %2770 = vmatpush1.bf16.msra.mxu0 %v3612_v42 }
  0x66   : > { %2772 = vmatprep.subr.bf16.mxu0 %v3615_v43 }
  0x67   : > { %2796 = vmatpush3.bf16.msra.mxu1 %v3659_v59 }
  0x68   : > { %2797 = vmatprep.subr.bf16.mxu1 %v3315_v48 }
  0x69   : > { %2774 = vmatpush1.bf16.msra.mxu0 %v3641_v53 }
  0x6a   : > { %2776 = vmatprep.subr.bf16.mxu0 %v3644_v54 }
  0x6b   : > { %2799 = vmatpush3.bf16.msra.mxu1 %v3695_v5 }
  0x6c   : > { %2800 = vmatprep.subr.bf16.mxu1 %v3315_v48 }
  0x6d   : > { %2778 = vmatpush1.bf16.msra.mxu0 %v3671_v63 }
  0x6e   : > { %2780 = vmatprep.subr.bf16.mxu0 %v3674_v0 }
  0x6f   : > { %2802 = vmatpush3.bf16.msra.mxu1 %v3730_v18 }
  0x70   : > { %2803 = vmatprep.subr.bf16.mxu1 %v3315_v48 }
  0x71   : > { %2782 = vmatpush1.bf16.msra.mxu0 %v3707_v9 }
  0x72   : > { %2784 = vmatprep.subr.bf16.mxu0 %v3711_v11 }
  0x73   : > { %2805 = vmatpush3.bf16.msra.mxu1 %v3756_v28 }
  0x74   : > { %2806 = vmatprep.subr.bf16.mxu1 %v3315_v48 }
  0x75   : > { %2786 = vmatpush1.bf16.msra.mxu0 %v3741_v21 }
  0x76   : > { %2788 = vmatprep.subr.bf16.mxu0 %v3745_v23 }
  0x77   : > { %2808 = vmatpush3.bf16.msra.mxu1 %v3777_v32 }
  0x78   : > { %2809 = vmatprep.subr.bf16.mxu1 %v3315_v48 }
  0x79   : > { %2790 = vmatpush1.bf16.msra.mxu0 %v3769_v31 }
  0x7a   : > { %2816 = vmatprep.subr.bf16.mxu0 %v3545_v17 }
  0x7b   : > { %2811 = vmatpush3.bf16.msra.mxu1 %v3792_v38 }
  0x7c   : > { %2812 = vmatprep.subr.bf16.mxu1 %v3315_v48 }
  0x7f   : > { %2814 = vmatpush3.bf16.msra.mxu1 %v3806_v41 }
  0x80   : > { %2847 = vmatprep.subr.bf16.mxu1 %v3315_v48 }
 0x115   : > { %v2349_v51 = vpop.f32.mrb[0].mxu1 }
 0x116   : > { %v3847_v52 = vadd.f32 %v2349_v51, %v499_v50  ;;  %v682_v55 = vpop.f32.mrb[1].mxu1 }
 0x117   : > { %v683_v46 = vadd.f32 %v682_v55, %v499_v50 }
 0x119   : > { %v2352_v56 = vpop.f32.mrb[2].mxu1 }
 0x11a   : > { %v3849_v57 = vadd.f32 %v2352_v56, %v499_v50  ;;  %v692_v58 = vpop.f32.mrb[3].mxu1 }
 0x11b   : > { %v3851_v60 = vadd.f32 %v692_v58, %v499_v50  ;;  %v3877_v58 = vld [vmem:[%s368_s12] sm:$0xff] }
 0x11c   : > { %vm884_vm1 = vcmp.gt.f32.partialorder %v3877_v58, 0.0  ;;  %vm1049_vm2 = vcmp.gt.f32.partialorder %v3877_v58, 1.0  ;;  %vm1214_vm3 = vcmp.gt.f32.partialorder %v3877_v58, 2.0  ;;  %vm1379_vm4 = vcmp.gt.f32.partialorder %v3877_v58, 3.0 }
 0x11d   : > { %v2355_v61 = vpop.f32.mrb[4].mxu1  ;;  %vm1544_vm5 = vcmp.gt.f32.partialorder %v3877_v58, 4.0  ;;  %vm1709_vm6 = vcmp.gt.f32.partialorder %v3877_v58, 5.0  ;;  %vm1874_vm7 = vcmp.gt.f32.partialorder %v3877_v58, 6.0  ;;  %vm2039_vm8 = vcmp.gt.f32.partialorder %v3877_v58, 7.0 }
 0x11e   : > { %v3853_v62 = vadd.f32 %v2355_v61, %v499_v50  ;;  %v702_v1 = vpop.f32.mrb[5].mxu1 }
 0x11f   : > { %v3855_v2 = vadd.f32 %v702_v1, %v499_v50 }
 0x121   : > { %v2358_v3 = vpop.f32.mrb[6].mxu1 }
 0x122   : > { %v3857_v4 = vadd.f32 %v2358_v3, %v499_v50  ;;  %v712_v6 = vpop.f32.mrb[7].mxu1 }
 0x123   : > { %v3859_v7 = vadd.f32 %v712_v6, %v499_v50 }
 0x12f   : > { %v787_v13 = vpop.f32.mrb[0].mxu0 }
 0x130   : > { %v3151_v16 = vadd.f32 %v787_v13, %v3861_v12  ;;  %v789_v19 = vpop.f32.mrb[1].mxu0 }
 0x131   : > { %v3152_v22 = vadd.f32 %v789_v19, %v3863_v14 }
 0x132   : > { %v2137_v20 = vmul.f32 -1.442695, %v3151_v16 }
 0x133   : > { %v2138_v24 = vmul.f32 -1.442695, %v3152_v22 }
 0x134   : > { %3210 = vpow2.f32 %v2137_v20 }
 0x135   : > { %v858_v27 = vpop.f32.mrb[8].mxu1  ;;  %3212 = vpow2.f32 %v2138_v24 }
 0x136   : > { %v2393_v29 = vpop.f32.mrb[9].mxu1  ;;  %v876_v44 = vadd.f32 %v3870_v39, %v858_v27 }
 0x13e   : > { %v3211_v30 = vpop.eup %3210 }
 0x13f   : > { %v866_v35 = vadd.f32 1.0, %v3211_v30  ;;  %v3213_v36 = vpop.eup %3212 }
 0x140   : > { %v873_v40 = vadd.f32 1.0, %v3213_v36 }
 0x141   : > { %3214 = vrcp.f32 %v866_v35 }
 0x142   : > { %3216 = vrcp.f32 %v873_v40 }
 0x14b   : > { %v3215_v45 = vpop.eup %3214 }
 0x14c   : > { %v877_v47 = vmul.f32 %v3215_v45, %v876_v44  ;;  %v3217_v56 = vpop.eup %3216 }
 0x14d   : > { %v880_v61 = vsub.f32 1.0, %v3217_v56  ;;  %v882_v6 = vmul.f32 %v3217_v56, %v3788_v37 }
 0x14e   : > { %v878_v51 = vadd.f32 %v877_v47, %v683_v46 }
 0x150   : > { %3218 = vtanh.f32 %v878_v51 }
 0x15a   : > { %v3219_v1 = vpop.eup %3218 }
 0x15b   : > { %v881_v3 = vmul.f32 %v3219_v1, %v880_v61 }
 0x15d   : > { %v883_v8 = vadd.f32 %v882_v6, %v881_v3 }
 0x15f   : > { %v3882_v50 = vsel %vm884_vm1, %v883_v8, %v3788_v37 }
 0x160   : > { %951 = vmatmul.mubr.f32.vlgmr.msra.gmra.mrb[2].mxu0 %v3882_v50  ;;  %2427 = vmatmul.mubr.f32.vlgmr.msra.gmra.mrb[10].mxu1 %v3882_v50 }
 0x161   : > { %2818 = vmatpush1.bf16.msra.mxu0 %v3565_v25  ;;  %2849 = vmatpush3.bf16.msra.mxu1 %v3630_v49 }
 0x162   : > { %2820 = vmatprep.subr.bf16.mxu0 %v3568_v26  ;;  %2850 = vmatprep.subr.bf16.mxu1 %v3315_v48 }
 0x163   : > { %1115 = vmatprep.mubr.f32.mxu0 %v3314_v15  ;;  %2461 = vmatprep.mubr.msk.f32.mxu1 %vm3316_vm0, %v3314_v15 }
 0x165   : > { %2822 = vmatpush1.bf16.msra.mxu0 %v3586_v33  ;;  %2852 = vmatpush3.bf16.msra.mxu1 %v3659_v59 }
 0x166   : > { %2824 = vmatprep.subr.bf16.mxu0 %v3589_v34  ;;  %2853 = vmatprep.subr.bf16.mxu1 %v3315_v48 }
 0x169   : > { %2826 = vmatpush1.bf16.msra.mxu0 %v3612_v42  ;;  %2855 = vmatpush3.bf16.msra.mxu1 %v3695_v5 }
 0x16a   : > { %2828 = vmatprep.subr.bf16.mxu0 %v3615_v43  ;;  %2856 = vmatprep.subr.bf16.mxu1 %v3315_v48 }
 0x16d   : > { %2830 = vmatpush1.bf16.msra.mxu0 %v3641_v53  ;;  %2858 = vmatpush3.bf16.msra.mxu1 %v3730_v18 }
 0x16e   : > { %2832 = vmatprep.subr.bf16.mxu0 %v3644_v54  ;;  %2859 = vmatprep.subr.bf16.mxu1 %v3315_v48 }
 0x171   : > { %2834 = vmatpush1.bf16.msra.mxu0 %v3671_v63  ;;  %2861 = vmatpush3.bf16.msra.mxu1 %v3756_v28 }
 0x172   : > { %2836 = vmatprep.subr.bf16.mxu0 %v3674_v0  ;;  %2862 = vmatprep.subr.bf16.mxu1 %v3315_v48 }
 0x175   : > { %2838 = vmatpush1.bf16.msra.mxu0 %v3707_v9  ;;  %2864 = vmatpush3.bf16.msra.mxu1 %v3777_v32 }
 0x176   : > { %2840 = vmatprep.subr.bf16.mxu0 %v3711_v11  ;;  %2865 = vmatprep.subr.bf16.mxu1 %v3315_v48 }
 0x179   : > { %2842 = vmatpush1.bf16.msra.mxu0 %v3741_v21  ;;  %2867 = vmatpush3.bf16.msra.mxu1 %v3792_v38 }
 0x17a   : > { %2844 = vmatprep.subr.bf16.mxu0 %v3745_v23  ;;  %2868 = vmatprep.subr.bf16.mxu1 %v3315_v48 }
 0x17d   : > { %2846 = vmatpush1.bf16.msra.mxu0 %v3769_v31  ;;  %2870 = vmatpush3.bf16.msra.mxu1 %v3806_v41 }
 0x17e   : > { %2872 = vmatprep.subr.bf16.mxu0 %v3545_v17  ;;  %2903 = vmatprep.subr.bf16.mxu1 %v3315_v48 }
 0x233   : > { %v952_v37 = vpop.f32.mrb[2].mxu0  ;;  %v1023_v55 = vpop.f32.mrb[10].mxu1 }
 0x234   : > { %v3153_v10 = vadd.f32 %v952_v37, %v3861_v12  ;;  %v954_v13 = vpop.f32.mrb[3].mxu0  ;;  %v2428_v16 = vpop.f32.mrb[11].mxu1  ;;  %v1041_v35 = vadd.f32 %v3870_v39, %v1023_v55 }
 0x235   : > { %v3154_v20 = vadd.f32 %v954_v13, %v3863_v14 }
 0x236   : > { %v2139_v19 = vmul.f32 -1.442695, %v3153_v10 }
 0x237   : > { %v2140_v22 = vmul.f32 -1.442695, %v3154_v20 }
 0x238   : > { %3220 = vpow2.f32 %v2139_v19 }
 0x239   : > { %3222 = vpow2.f32 %v2140_v22 }
 0x242   : > { %v3221_v24 = vpop.eup %3220 }
 0x243   : > { %v1031_v27 = vadd.f32 1.0, %v3221_v24  ;;  %v3223_v29 = vpop.eup %3222 }
 0x244   : > { %v1038_v30 = vadd.f32 1.0, %v3223_v29 }
 0x245   : > { %3224 = vrcp.f32 %v1031_v27 }
 0x246   : > { %3226 = vrcp.f32 %v1038_v30 }
 0x24f   : > { %v3225_v36 = vpop.eup %3224 }
 0x250   : > { %v1042_v40 = vmul.f32 %v3225_v36, %v1041_v35  ;;  %v3227_v45 = vpop.eup %3226 }
 0x251   : > { %v1045_v46 = vsub.f32 1.0, %v3227_v45  ;;  %v1047_v56 = vmul.f32 %v3227_v45, %v3882_v50 }
 0x252   : > { %v1043_v44 = vadd.f32 %v1042_v40, %v3847_v52 }
 0x254   : > { %3228 = vtanh.f32 %v1043_v44 }
 0x25e   : > { %v3229_v47 = vpop.eup %3228 }
 0x25f   : > { %v1046_v51 = vmul.f32 %v3229_v47, %v1045_v46 }
 0x261   : > { %v1048_v61 = vadd.f32 %v1047_v56, %v1046_v51 }
 0x263   : > { %v3928_v1 = vsel %vm1049_vm2, %v1048_v61, %v3882_v50 }
 0x264   : > { %1116 = vmatmul.mubr.f32.vlgmr.msra.gmra.mrb[4].mxu0 %v3928_v1  ;;  %2462 = vmatmul.mubr.f32.vlgmr.msra.gmra.mrb[12].mxu1 %v3928_v1 }
 0x265   : > { %2874 = vmatpush1.bf16.msra.mxu0 %v3565_v25  ;;  %2905 = vmatpush3.bf16.msra.mxu1 %v3630_v49 }
 0x266   : > { %2876 = vmatprep.subr.bf16.mxu0 %v3568_v26  ;;  %2906 = vmatprep.subr.bf16.mxu1 %v3315_v48 }
 0x267   : > { %1280 = vmatprep.mubr.f32.mxu0 %v3314_v15  ;;  %2496 = vmatprep.mubr.msk.f32.mxu1 %vm3316_vm0, %v3314_v15 }
 0x269   : > { %2878 = vmatpush1.bf16.msra.mxu0 %v3586_v33  ;;  %2908 = vmatpush3.bf16.msra.mxu1 %v3659_v59 }
 0x26a   : > { %2880 = vmatprep.subr.bf16.mxu0 %v3589_v34  ;;  %2909 = vmatprep.subr.bf16.mxu1 %v3315_v48 }
 0x26d   : > { %2882 = vmatpush1.bf16.msra.mxu0 %v3612_v42  ;;  %2911 = vmatpush3.bf16.msra.mxu1 %v3695_v5 }
 0x26e   : > { %2884 = vmatprep.subr.bf16.mxu0 %v3615_v43  ;;  %2912 = vmatprep.subr.bf16.mxu1 %v3315_v48 }
 0x271   : > { %2886 = vmatpush1.bf16.msra.mxu0 %v3641_v53  ;;  %2914 = vmatpush3.bf16.msra.mxu1 %v3730_v18 }
 0x272   : > { %2888 = vmatprep.subr.bf16.mxu0 %v3644_v54  ;;  %2915 = vmatprep.subr.bf16.mxu1 %v3315_v48 }
 0x275   : > { %2890 = vmatpush1.bf16.msra.mxu0 %v3671_v63  ;;  %2917 = vmatpush3.bf16.msra.mxu1 %v3756_v28 }
 0x276   : > { %2892 = vmatprep.subr.bf16.mxu0 %v3674_v0  ;;  %2918 = vmatprep.subr.bf16.mxu1 %v3315_v48 }
 0x279   : > { %2894 = vmatpush1.bf16.msra.mxu0 %v3707_v9  ;;  %2920 = vmatpush3.bf16.msra.mxu1 %v3777_v32 }
 0x27a   : > { %2896 = vmatprep.subr.bf16.mxu0 %v3711_v11  ;;  %2921 = vmatprep.subr.bf16.mxu1 %v3315_v48 }
 0x27d   : > { %2898 = vmatpush1.bf16.msra.mxu0 %v3741_v21  ;;  %2923 = vmatpush3.bf16.msra.mxu1 %v3792_v38 }
 0x27e   : > { %2900 = vmatprep.subr.bf16.mxu0 %v3745_v23  ;;  %2924 = vmatprep.subr.bf16.mxu1 %v3315_v48 }
 0x281   : > { %2902 = vmatpush1.bf16.msra.mxu0 %v3769_v31  ;;  %2926 = vmatpush3.bf16.msra.mxu1 %v3806_v41 }
 0x282   : > { %2928 = vmatprep.subr.bf16.mxu0 %v3545_v17  ;;  %2959 = vmatprep.subr.bf16.mxu1 %v3315_v48 }
 0x337   : > { %v1117_v52 = vpop.f32.mrb[4].mxu0  ;;  %v1188_v3 = vpop.f32.mrb[12].mxu1 }
 0x338   : > { %v3155_v6 = vadd.f32 %v1117_v52, %v3861_v12  ;;  %v1119_v8 = vpop.f32.mrb[5].mxu0  ;;  %v2463_v50 = vpop.f32.mrb[13].mxu1  ;;  %v1206_v22 = vadd.f32 %v3870_v39, %v1188_v3 }
 0x339   : > { %v3156_v55 = vadd.f32 %v1119_v8, %v3863_v14 }
 0x33a   : > { %v2141_v37 = vmul.f32 -1.442695, %v3155_v6 }
 0x33b   : > { %v2142_v10 = vmul.f32 -1.442695, %v3156_v55 }
 0x33c   : > { %3230 = vpow2.f32 %v2141_v37 }
 0x33d   : > { %3232 = vpow2.f32 %v2142_v10 }
 0x346   : > { %v3231_v13 = vpop.eup %3230 }
 0x347   : > { %v1196_v16 = vadd.f32 1.0, %v3231_v13  ;;  %v3233_v19 = vpop.eup %3232 }
 0x348   : > { %v1203_v20 = vadd.f32 1.0, %v3233_v19 }
 0x349   : > { %3234 = vrcp.f32 %v1196_v16 }
 0x34a   : > { %3236 = vrcp.f32 %v1203_v20 }
 0x353   : > { %v3235_v24 = vpop.eup %3234 }
 0x354   : > { %v1207_v27 = vmul.f32 %v3235_v24, %v1206_v22  ;;  %v3237_v30 = vpop.eup %3236 }
 0x355   : > { %v1210_v35 = vsub.f32 1.0, %v3237_v30  ;;  %v1212_v44 = vmul.f32 %v3237_v30, %v3928_v1 }
 0x356   : > { %v1208_v29 = vadd.f32 %v1207_v27, %v3851_v60 }
 0x358   : > { %3238 = vtanh.f32 %v1208_v29 }
 0x362   : > { %v3239_v36 = vpop.eup %3238 }
 0x363   : > { %v1211_v40 = vmul.f32 %v3239_v36, %v1210_v35 }
 0x365   : > { %v1213_v45 = vadd.f32 %v1212_v44, %v1211_v40 }
 0x367   : > { %v3974_v46 = vsel %vm1214_vm3, %v1213_v45, %v3928_v1 }
 0x368   : > { %1281 = vmatmul.mubr.f32.vlgmr.msra.gmra.mrb[6].mxu0 %v3974_v46  ;;  %2497 = vmatmul.mubr.f32.vlgmr.msra.gmra.mrb[14].mxu1 %v3974_v46 }
 0x369   : > { %2930 = vmatpush1.bf16.msra.mxu0 %v3565_v25  ;;  %2961 = vmatpush3.bf16.msra.mxu1 %v3630_v49 }
 0x36a   : > { %2932 = vmatprep.subr.bf16.mxu0 %v3568_v26  ;;  %2962 = vmatprep.subr.bf16.mxu1 %v3315_v48 }
 0x36b   : > { %1445 = vmatprep.mubr.f32.mxu0 %v3314_v15  ;;  %2531 = vmatprep.mubr.msk.f32.mxu1 %vm3316_vm0, %v3314_v15 }
 0x36d   : > { %2934 = vmatpush1.bf16.msra.mxu0 %v3586_v33  ;;  %2964 = vmatpush3.bf16.msra.mxu1 %v3659_v59 }
 0x36e   : > { %2936 = vmatprep.subr.bf16.mxu0 %v3589_v34  ;;  %2965 = vmatprep.subr.bf16.mxu1 %v3315_v48 }
 0x371   : > { %2938 = vmatpush1.bf16.msra.mxu0 %v3612_v42  ;;  %2967 = vmatpush3.bf16.msra.mxu1 %v3695_v5 }
 0x372   : > { %2940 = vmatprep.subr.bf16.mxu0 %v3615_v43  ;;  %2968 = vmatprep.subr.bf16.mxu1 %v3315_v48 }
 0x375   : > { %2942 = vmatpush1.bf16.msra.mxu0 %v3641_v53  ;;  %2970 = vmatpush3.bf16.msra.mxu1 %v3730_v18 }
 0x376   : > { %2944 = vmatprep.subr.bf16.mxu0 %v3644_v54  ;;  %2971 = vmatprep.subr.bf16.mxu1 %v3315_v48 }
 0x379   : > { %2946 = vmatpush1.bf16.msra.mxu0 %v3671_v63  ;;  %2973 = vmatpush3.bf16.msra.mxu1 %v3756_v28 }
 0x37a   : > { %2948 = vmatprep.subr.bf16.mxu0 %v3674_v0  ;;  %2974 = vmatprep.subr.bf16.mxu1 %v3315_v48 }
 0x37d   : > { %2950 = vmatpush1.bf16.msra.mxu0 %v3707_v9  ;;  %2976 = vmatpush3.bf16.msra.mxu1 %v3777_v32 }
 0x37e   : > { %2952 = vmatprep.subr.bf16.mxu0 %v3711_v11  ;;  %2977 = vmatprep.subr.bf16.mxu1 %v3315_v48 }
 0x381   : > { %2954 = vmatpush1.bf16.msra.mxu0 %v3741_v21  ;;  %2979 = vmatpush3.bf16.msra.mxu1 %v3792_v38 }
 0x382   : > { %2956 = vmatprep.subr.bf16.mxu0 %v3745_v23  ;;  %2980 = vmatprep.subr.bf16.mxu1 %v3315_v48 }
 0x385   : > { %2958 = vmatpush1.bf16.msra.mxu0 %v3769_v31  ;;  %2982 = vmatpush3.bf16.msra.mxu1 %v3806_v41 }
 0x386   : > { %2984 = vmatprep.subr.bf16.mxu0 %v3545_v17  ;;  %3015 = vmatprep.subr.bf16.mxu1 %v3315_v48 }
 0x43b   : > { %v1282_v60 = vpop.f32.mrb[6].mxu0  ;;  %v1353_v47 = vpop.f32.mrb[14].mxu1 }
 0x43c   : > { %v3157_v51 = vadd.f32 %v1282_v60, %v3861_v12  ;;  %v1284_v56 = vpop.f32.mrb[7].mxu0  ;;  %v2498_v61 = vpop.f32.mrb[15].mxu1  ;;  %v1371_v55 = vadd.f32 %v3870_v39, %v1353_v47 }
 0x43d   : > { %v3158_v52 = vadd.f32 %v1284_v56, %v3863_v14 }
 0x43e   : > { %v2143_v1 = vmul.f32 -1.442695, %v3157_v51 }
 0x43f   : > { %v2144_v3 = vmul.f32 -1.442695, %v3158_v52 }
 0x440   : > { %3240 = vpow2.f32 %v2143_v1 }
 0x441   : > { %3242 = vpow2.f32 %v2144_v3 }
 0x44a   : > { %v3241_v6 = vpop.eup %3240 }
 0x44b   : > { %v1361_v8 = vadd.f32 1.0, %v3241_v6  ;;  %v3243_v50 = vpop.eup %3242 }
 0x44c   : > { %v1368_v37 = vadd.f32 1.0, %v3243_v50 }
 0x44d   : > { %3244 = vrcp.f32 %v1361_v8 }
 0x44e   : > { %3246 = vrcp.f32 %v1368_v37 }
 0x457   : > { %v3245_v10 = vpop.eup %3244 }
 0x458   : > { %v1372_v13 = vmul.f32 %v3245_v10, %v1371_v55  ;;  %v3247_v19 = vpop.eup %3246 }
 0x459   : > { %v1375_v20 = vsub.f32 1.0, %v3247_v19  ;;  %v1377_v27 = vmul.f32 %v3247_v19, %v3974_v46 }
 0x45a   : > { %v1373_v16 = vadd.f32 %v1372_v13, %v3849_v57 }
 0x45c   : > { %3248 = vtanh.f32 %v1373_v16 }
 0x466   : > { %v3249_v22 = vpop.eup %3248 }
 0x467   : > { %v1376_v24 = vmul.f32 %v3249_v22, %v1375_v20 }
 0x469   : > { %v1378_v29 = vadd.f32 %v1377_v27, %v1376_v24 }
 0x46b   : > { %v4020_v30 = vsel %vm1379_vm4, %v1378_v29, %v3974_v46 }
 0x46c   : > { %1446 = vmatmul.mubr.f32.vlgmr.msra.gmra.mrb[8].mxu0 %v4020_v30  ;;  %2532 = vmatmul.mubr.f32.vlgmr.msra.gmra.mrb[16].mxu1 %v4020_v30 }
 0x46d   : > { %2986 = vmatpush1.bf16.msra.mxu0 %v3565_v25  ;;  %3017 = vmatpush3.bf16.msra.mxu1 %v3630_v49 }
 0x46e   : > { %2988 = vmatprep.subr.bf16.mxu0 %v3568_v26  ;;  %3018 = vmatprep.subr.bf16.mxu1 %v3315_v48 }
 0x46f   : > { %1610 = vmatprep.mubr.f32.mxu0 %v3314_v15  ;;  %2566 = vmatprep.mubr.msk.f32.mxu1 %vm3316_vm0, %v3314_v15 }
 0x471   : > { %2990 = vmatpush1.bf16.msra.mxu0 %v3586_v33  ;;  %3020 = vmatpush3.bf16.msra.mxu1 %v3659_v59 }
 0x472   : > { %2992 = vmatprep.subr.bf16.mxu0 %v3589_v34  ;;  %3021 = vmatprep.subr.bf16.mxu1 %v3315_v48 }
 0x475   : > { %2994 = vmatpush1.bf16.msra.mxu0 %v3612_v42  ;;  %3023 = vmatpush3.bf16.msra.mxu1 %v3695_v5 }
 0x476   : > { %2996 = vmatprep.subr.bf16.mxu0 %v3615_v43  ;;  %3024 = vmatprep.subr.bf16.mxu1 %v3315_v48 }
 0x479   : > { %2998 = vmatpush1.bf16.msra.mxu0 %v3641_v53  ;;  %3026 = vmatpush3.bf16.msra.mxu1 %v3730_v18 }
 0x47a   : > { %3000 = vmatprep.subr.bf16.mxu0 %v3644_v54  ;;  %3027 = vmatprep.subr.bf16.mxu1 %v3315_v48 }
 0x47d   : > { %3002 = vmatpush1.bf16.msra.mxu0 %v3671_v63  ;;  %3029 = vmatpush3.bf16.msra.mxu1 %v3756_v28 }
 0x47e   : > { %3004 = vmatprep.subr.bf16.mxu0 %v3674_v0  ;;  %3030 = vmatprep.subr.bf16.mxu1 %v3315_v48 }
 0x481   : > { %3006 = vmatpush1.bf16.msra.mxu0 %v3707_v9  ;;  %3032 = vmatpush3.bf16.msra.mxu1 %v3777_v32 }
 0x482   : > { %3008 = vmatprep.subr.bf16.mxu0 %v3711_v11  ;;  %3033 = vmatprep.subr.bf16.mxu1 %v3315_v48 }
 0x485   : > { %3010 = vmatpush1.bf16.msra.mxu0 %v3741_v21  ;;  %3035 = vmatpush3.bf16.msra.mxu1 %v3792_v38 }
 0x486   : > { %3012 = vmatprep.subr.bf16.mxu0 %v3745_v23  ;;  %3036 = vmatprep.subr.bf16.mxu1 %v3315_v48 }
 0x489   : > { %3014 = vmatpush1.bf16.msra.mxu0 %v3769_v31  ;;  %3038 = vmatpush3.bf16.msra.mxu1 %v3806_v41 }
 0x48a   : > { %3040 = vmatprep.subr.bf16.mxu0 %v3545_v17  ;;  %3071 = vmatprep.subr.bf16.mxu1 %v3315_v48 }
 0x53f   : > { %v1447_v57 = vpop.f32.mrb[8].mxu0  ;;  %v1518_v35 = vpop.f32.mrb[16].mxu1 }
 0x540   : > { %v3159_v36 = vadd.f32 %v1447_v57, %v3861_v12  ;;  %v1449_v40 = vpop.f32.mrb[9].mxu0  ;;  %v2533_v44 = vpop.f32.mrb[17].mxu1  ;;  %v1536_v1 = vadd.f32 %v3870_v39, %v1518_v35 }
 0x541   : > { %v3160_v46 = vadd.f32 %v1449_v40, %v3863_v14 }
 0x542   : > { %v2145_v45 = vmul.f32 -1.442695, %v3159_v36 }
 0x543   : > { %v2146_v60 = vmul.f32 -1.442695, %v3160_v46 }
 0x544   : > { %3250 = vpow2.f32 %v2145_v45 }
 0x545   : > { %3252 = vpow2.f32 %v2146_v60 }
 0x54e   : > { %v3251_v47 = vpop.eup %3250 }
 0x54f   : > { %v1526_v51 = vadd.f32 1.0, %v3251_v47  ;;  %v3253_v56 = vpop.eup %3252 }
 0x550   : > { %v1533_v61 = vadd.f32 1.0, %v3253_v56 }
 0x551   : > { %3254 = vrcp.f32 %v1526_v51 }
 0x552   : > { %3256 = vrcp.f32 %v1533_v61 }
 0x55b   : > { %v3255_v52 = vpop.eup %3254 }
 0x55c   : > { %v1537_v3 = vmul.f32 %v3255_v52, %v1536_v1  ;;  %v3257_v8 = vpop.eup %3256 }
 0x55d   : > { %v1540_v50 = vsub.f32 1.0, %v3257_v8  ;;  %v1542_v10 = vmul.f32 %v3257_v8, %v4020_v30 }
 0x55e   : > { %v1538_v6 = vadd.f32 %v1537_v3, %v3855_v2 }
 0x560   : > { %3258 = vtanh.f32 %v1538_v6 }
 0x56a   : > { %v3259_v37 = vpop.eup %3258 }
 0x56b   : > { %v1541_v55 = vmul.f32 %v3259_v37, %v1540_v50 }
 0x56d   : > { %v1543_v13 = vadd.f32 %v1542_v10, %v1541_v55 }
 0x56f   : > { %v4066_v16 = vsel %vm1544_vm5, %v1543_v13, %v4020_v30 }
 0x570   : > { %1611 = vmatmul.mubr.f32.vlgmr.msra.gmra.mrb[10].mxu0 %v4066_v16  ;;  %2567 = vmatmul.mubr.f32.vlgmr.msra.gmra.mrb[18].mxu1 %v4066_v16 }
 0x571   : > { %3042 = vmatpush1.bf16.msra.mxu0 %v3565_v25  ;;  %3073 = vmatpush3.bf16.msra.mxu1 %v3630_v49 }
 0x572   : > { %3044 = vmatprep.subr.bf16.mxu0 %v3568_v26  ;;  %3074 = vmatprep.subr.bf16.mxu1 %v3315_v48 }
 0x573   : > { %1775 = vmatprep.mubr.f32.mxu0 %v3314_v15  ;;  %2601 = vmatprep.mubr.msk.f32.mxu1 %vm3316_vm0, %v3314_v15 }
 0x575   : > { %3046 = vmatpush1.bf16.msra.mxu0 %v3586_v33  ;;  %3076 = vmatpush3.bf16.msra.mxu1 %v3659_v59 }
 0x576   : > { %3048 = vmatprep.subr.bf16.mxu0 %v3589_v34  ;;  %3077 = vmatprep.subr.bf16.mxu1 %v3315_v48 }
 0x579   : > { %3050 = vmatpush1.bf16.msra.mxu0 %v3612_v42  ;;  %3079 = vmatpush3.bf16.msra.mxu1 %v3695_v5 }
 0x57a   : > { %3052 = vmatprep.subr.bf16.mxu0 %v3615_v43  ;;  %3080 = vmatprep.subr.bf16.mxu1 %v3315_v48 }
 0x57d   : > { %3054 = vmatpush1.bf16.msra.mxu0 %v3641_v53  ;;  %3082 = vmatpush3.bf16.msra.mxu1 %v3730_v18 }
 0x57e   : > { %3056 = vmatprep.subr.bf16.mxu0 %v3644_v54  ;;  %3083 = vmatprep.subr.bf16.mxu1 %v3315_v48 }
 0x581   : > { %3058 = vmatpush1.bf16.msra.mxu0 %v3671_v63  ;;  %3085 = vmatpush3.bf16.msra.mxu1 %v3756_v28 }
 0x582   : > { %3060 = vmatprep.subr.bf16.mxu0 %v3674_v0  ;;  %3086 = vmatprep.subr.bf16.mxu1 %v3315_v48 }
 0x585   : > { %3062 = vmatpush1.bf16.msra.mxu0 %v3707_v9  ;;  %3088 = vmatpush3.bf16.msra.mxu1 %v3777_v32 }
 0x586   : > { %3064 = vmatprep.subr.bf16.mxu0 %v3711_v11  ;;  %3089 = vmatprep.subr.bf16.mxu1 %v3315_v48 }
 0x589   : > { %3066 = vmatpush1.bf16.msra.mxu0 %v3741_v21  ;;  %3091 = vmatpush3.bf16.msra.mxu1 %v3792_v38 }
 0x58a   : > { %3068 = vmatprep.subr.bf16.mxu0 %v3745_v23  ;;  %3092 = vmatprep.subr.bf16.mxu1 %v3315_v48 }
 0x58d   : > { %3070 = vmatpush1.bf16.msra.mxu0 %v3769_v31  ;;  %3094 = vmatpush3.bf16.msra.mxu1 %v3806_v41 }
 0x58e   : > { %3096 = vmatprep.subr.bf16.mxu0 %v3545_v17  ;;  %3127 = vmatprep.subr.bf16.mxu1 %v3315_v48 }
 0x643   : > { %v1612_v2 = vpop.f32.mrb[10].mxu0  ;;  %v1683_v19 = vpop.f32.mrb[18].mxu1 }
 0x644   : > { %v3161_v20 = vadd.f32 %v1612_v2, %v3861_v12  ;;  %v1614_v22 = vpop.f32.mrb[11].mxu0  ;;  %v2568_v24 = vpop.f32.mrb[19].mxu1  ;;  %v1701_v17 = vadd.f32 %v3870_v39, %v1683_v19 }
 0x645   : > { %v3162_v29 = vadd.f32 %v1614_v22, %v3863_v14 }
 0x646   : > { %v2147_v27 = vmul.f32 -1.442695, %v3161_v20 }
 0x647   : > { %v2148_v30 = vmul.f32 -1.442695, %v3162_v29 }
 0x648   : > { %3260 = vpow2.f32 %v2147_v27 }
 0x649   : > { %3262 = vpow2.f32 %v2148_v30 }
 0x652   : > { %v3261_v57 = vpop.eup %3260 }
 0x653   : > { %v1691_v35 = vadd.f32 1.0, %v3261_v57  ;;  %v3263_v36 = vpop.eup %3262 }
 0x654   : > { %v1698_v40 = vadd.f32 1.0, %v3263_v36 }
 0x655   : > { %3264 = vrcp.f32 %v1691_v35 }
 0x656   : > { %3266 = vrcp.f32 %v1698_v40 }
 0x65f   : > { %v3265_v44 = vpop.eup %3264 }
 0x660   : > { %v1702_v45 = vmul.f32 %v3265_v44, %v1701_v17  ;;  %v3267_v60 = vpop.eup %3266 }
 0x661   : > { %v1705_v47 = vsub.f32 1.0, %v3267_v60  ;;  %v1707_v61 = vmul.f32 %v3267_v60, %v4066_v16 }
 0x662   : > { %v1703_v46 = vadd.f32 %v1702_v45, %v3853_v62 }
 0x664   : > { %3268 = vtanh.f32 %v1703_v46 }
 0x66e   : > { %v3269_v51 = vpop.eup %3268 }
 0x66f   : > { %v1706_v56 = vmul.f32 %v3269_v51, %v1705_v47 }
 0x671   : > { %v1708_v1 = vadd.f32 %v1707_v61, %v1706_v56 }
 0x673   : > { %v4112_v52 = vsel %vm1709_vm6, %v1708_v1, %v4066_v16 }
 0x674   : > { %1776 = vmatmul.mubr.f32.vlgmr.msra.gmra.mrb[12].mxu0 %v4112_v52  ;;  %2602 = vmatmul.mubr.f32.vlgmr.msra.gmra.mrb[20].mxu1 %v4112_v52 }
 0x675   : > { %3098 = vmatpush1.bf16.msra.mxu0 %v3565_v25  ;;  %3129 = vmatpush3.bf16.msra.mxu1 %v3630_v49 }
 0x676   : > { %3100 = vmatprep.subr.bf16.mxu0 %v3568_v26  ;;  %3130 = vmatprep.subr.bf16.mxu1 %v3315_v48 }
 0x677   : > { %1940 = vmatprep.mubr.f32.mxu0 %v3314_v15  ;;  %2636 = vmatprep.mubr.msk.f32.mxu1 %vm3316_vm0, %v3314_v15 }
 0x679   : > { %3102 = vmatpush1.bf16.msra.mxu0 %v3586_v33  ;;  %3132 = vmatpush3.bf16.msra.mxu1 %v3659_v59 }
 0x67a   : > { %3104 = vmatprep.subr.bf16.mxu0 %v3589_v34  ;;  %3133 = vmatprep.subr.bf16.mxu1 %v3315_v48 }
 0x67d   : > { %3106 = vmatpush1.bf16.msra.mxu0 %v3612_v42  ;;  %3135 = vmatpush3.bf16.msra.mxu1 %v3695_v5 }
 0x67e   : > { %3108 = vmatprep.subr.bf16.mxu0 %v3615_v43  ;;  %3136 = vmatprep.subr.bf16.mxu1 %v3315_v48 }
 0x681   : > { %3110 = vmatpush1.bf16.msra.mxu0 %v3641_v53  ;;  %3138 = vmatpush3.bf16.msra.mxu1 %v3730_v18 }
 0x682   : > { %3112 = vmatprep.subr.bf16.mxu0 %v3644_v54  ;;  %3139 = vmatprep.subr.bf16.mxu1 %v3315_v48 }
 0x685   : > { %3114 = vmatpush1.bf16.msra.mxu0 %v3671_v63  ;;  %3141 = vmatpush3.bf16.msra.mxu1 %v3756_v28 }
 0x686   : > { %3116 = vmatprep.subr.bf16.mxu0 %v3674_v0  ;;  %3142 = vmatprep.subr.bf16.mxu1 %v3315_v48 }
 0x689   : > { %3118 = vmatpush1.bf16.msra.mxu0 %v3707_v9  ;;  %3144 = vmatpush3.bf16.msra.mxu1 %v3777_v32 }
 0x68a   : > { %3120 = vmatprep.subr.bf16.mxu0 %v3711_v11  ;;  %3145 = vmatprep.subr.bf16.mxu1 %v3315_v48 }
 0x68d   : > { %3122 = vmatpush1.bf16.msra.mxu0 %v3741_v21  ;;  %3147 = vmatpush3.bf16.msra.mxu1 %v3792_v38 }
 0x68e   : > { %3124 = vmatprep.subr.bf16.mxu0 %v3745_v23  ;;  %3148 = vmatprep.subr.bf16.mxu1 %v3315_v48 }
 0x691   : > { %3126 = vmatpush1.bf16.msra.mxu0 %v3769_v31  ;;  %3150 = vmatpush3.bf16.msra.mxu1 %v3806_v41 }
 0x747   : > { %v1777_v15 = vpop.f32.mrb[12].mxu0  ;;  %v1848_v25 = vpop.f32.mrb[20].mxu1 }
 0x748   : > { %v3163_v26 = vadd.f32 %v1777_v15, %v3861_v12  ;;  %v1779_v33 = vpop.f32.mrb[13].mxu0  ;;  %v2603_v34 = vpop.f32.mrb[21].mxu1  ;;  %v1866_v63 = vadd.f32 %v3870_v39, %v1848_v25 }
 0x749   : > { %v3164_v43 = vadd.f32 %v1779_v33, %v3863_v14 }
 0x74a   : > { %v2149_v42 = vmul.f32 -1.442695, %v3163_v26 }
 0x74b   : > { %v2150_v49 = vmul.f32 -1.442695, %v3164_v43 }
 0x74c   : > { %3270 = vpow2.f32 %v2149_v42 }
 0x74d   : > { %3272 = vpow2.f32 %v2150_v49 }
 0x756   : > { %v3271_v53 = vpop.eup %3270 }
 0x757   : > { %v1856_v54 = vadd.f32 1.0, %v3271_v53  ;;  %v3273_v48 = vpop.eup %3272 }
 0x758   : > { %v1863_v59 = vadd.f32 1.0, %v3273_v48 }
 0x759   : > { %3274 = vrcp.f32 %v1856_v54 }
 0x75a   : > { %3276 = vrcp.f32 %v1863_v59 }
 0x763   : > { %v3275_v0 = vpop.eup %3274 }
 0x764   : > { %v1867_v5 = vmul.f32 %v3275_v0, %v1866_v63  ;;  %v3277_v11 = vpop.eup %3276 }
 0x765   : > { %v1870_v18 = vsub.f32 1.0, %v3277_v11  ;;  %v1872_v28 = vmul.f32 %v3277_v11, %v4112_v52 }
 0x766   : > { %v1868_v9 = vadd.f32 %v1867_v5, %v3859_v7 }
 0x768   : > { %3278 = vtanh.f32 %v1868_v9 }
 0x772   : > { %v3279_v21 = vpop.eup %3278 }
 0x773   : > { %v1871_v23 = vmul.f32 %v3279_v21, %v1870_v18 }
 0x775   : > { %v1873_v31 = vadd.f32 %v1872_v28, %v1871_v23 }
 0x777   : > { %v1875_v32 = vsel %vm1874_vm7, %v1873_v31, %v4112_v52 }
 0x778   : > { %1941 = vmatmul.mubr.f32.vlgmr.msra.gmra.mrb[14].mxu0 %v1875_v32  ;;  %2637 = vmatmul.mubr.f32.vlgmr.msra.gmra.mrb[22].mxu1 %v1875_v32 }
 0x84b   : > { %v1942_v38 = vpop.f32.mrb[14].mxu0  ;;  %v2013_v41 = vpop.f32.mrb[22].mxu1 }
 0x84c   : > { %v3165_v62 = vadd.f32 %v1942_v38, %v3861_v12  ;;  %v1944_v3 = vpop.f32.mrb[15].mxu0  ;;  %v2638_v7 = vpop.f32.mrb[23].mxu1  ;;  %v2031_v16 = vadd.f32 %v3870_v39, %v2013_v41 }
 0x84d   : > { %v3166_v8 = vadd.f32 %v1944_v3, %v3863_v14 }
 0x84e   : > { %v2151_v6 = vmul.f32 -1.442695, %v3165_v62 }
 0x84f   : > { %v2152_v50 = vmul.f32 -1.442695, %v3166_v8 }
 0x850   : > { %3280 = vpow2.f32 %v2151_v6 }
 0x851   : > { %3282 = vpow2.f32 %v2152_v50 }
 0x85a   : > { %v3281_v37 = vpop.eup %3280 }
 0x85b   : > { %v2021_v55 = vadd.f32 1.0, %v3281_v37  ;;  %v3283_v10 = vpop.eup %3282 }
 0x85c   : > { %v2028_v13 = vadd.f32 1.0, %v3283_v10 }
 0x85d   : > { %3284 = vrcp.f32 %v2021_v55 }
 0x85e   : > { %3286 = vrcp.f32 %v2028_v13 }
 0x867   : > { %v3285_v2 = vpop.eup %3284 }
 0x868   : > { %v2032_v19 = vmul.f32 %v3285_v2, %v2031_v16  ;;  %v3287_v20 = vpop.eup %3286 }
 0x869   : > { %v2035_v22 = vsub.f32 1.0, %v3287_v20  ;;  %v2037_v27 = vmul.f32 %v3287_v20, %v1875_v32 }
 0x86a   : > { %v2033_v12 = vadd.f32 %v2032_v19, %v3857_v4 }
 0x86c   : > { %3288 = vtanh.f32 %v2033_v12 }
 0x876   : > { %v3289_v14 = vpop.eup %3288 }
 0x877   : > { %v2036_v24 = vmul.f32 %v3289_v14, %v2035_v22 }
 0x879   : > { %v2038_v29 = vadd.f32 %v2037_v27, %v2036_v24 }
 0x87b   : > { %v2040_v30 = vsel %vm2039_vm8, %v2038_v29, %v1875_v32 }
 0x87c   : > { %2041 = vst [vmem:[%s372_s15] sm:$0xff] %v2040_v30 }
 0x87d PF: > { %p14_p9 = scmp.ge.s32.totalorder %s3374_s28, 4   ;;  %s4184_s24 = smov %s3308_s25 }
 0x87e   : > { %s4185_s25 = smov %s3383_s8  ;;  %s4186_s26 = smov %s3374_s28 }
 0x87f   :  { %16 = sbr.rel (!%p14_p9) target bundleno = 2 (0x2), region = 127 }

</bundles_post_ra>
